<compile_context>
chip_gen: v7x
topology: tpu7x:2x2x1
jax: 0.10.0
libtpu: 0.0.40
codegen_flags: <defaults>
</compile_context>

<pallas_src>
import functools
import math

import jax
import jax.numpy as jnp
from jax import lax
from jax.experimental import pallas as pl
from jax.experimental.pallas import tpu as pltpu

_EPS = 1e-8
# Leave headroom vs v7x's 64 MiB/TC physical VMEM; plenty for v5e/v6e (128 MiB).
_VMEM_LIMIT = 48 * 1024 * 1024


def _fake_quant_weight(w, bits):
    """SymQuantizer.forward (layerwise, no clip) as used on QuantizeLinear weights."""
    max_abs = jnp.maximum(jnp.max(jnp.abs(w)), _EPS)
    s = (2.0 ** (bits - 1) - 1.0) / max_abs
    return jnp.round(w * s) / s


def prepare_params(params, *, weight_bits=8):
    """Hoisted weight fake-quant: done once at parameter-prep time; weights are stored as
    bf16 MXU operands (matmuls keep an f32 accumulator via preferred_element_type)."""
    out = dict(params)
    for name in ('wq', 'wk', 'wv', 'wo'):
        out[name] = _fake_quant_weight(params[name], weight_bits).astype(jnp.bfloat16)
    return out


# ----------------------- kernel 1: fused Q/K/V projection ---------------------------------
def _qkv_proj_kernel(x_ref, wq_ref, bq_ref, wk_ref, bk_ref, wv_ref, bv_ref,
                     q_ref, k_ref, v_ref, pmax_ref):
    x = x_ref[0].astype(jnp.bfloat16)                         # (tq, H)

    def proj(w_ref, b_ref, o_ref):
        y = jnp.dot(x, w_ref[...], preferred_element_type=jnp.float32) + b_ref[...]
        o_ref[0] = y                                          # lane-dense (tq, H) store
        return jnp.max(jnp.abs(y))

    mq = proj(wq_ref, bq_ref, q_ref)
    mk = proj(wk_ref, bk_ref, k_ref)
    mv = proj(wv_ref, bv_ref, v_ref)
    # per-block |.|max partials (lane-broadcast so the output block is (.., 128)-dense)
    pmax_ref[...] = jnp.concatenate(
        [jnp.full((1, 1, 1, 128), mq, jnp.float32),
         jnp.full((1, 1, 1, 128), mk, jnp.float32),
         jnp.full((1, 1, 1, 128), mv, jnp.float32)], axis=2)


# -------------------- kernel 2: attention scores + softmax (per batch, q-tile) ------------
def _attn_scores_kernel(scale_ref, q_ref, k_ref, mask_ref,
                        scores_ref, probs_ref, pmax_ref,
                        *, num_heads, head_dim, clip_val):
    s_q, s_k, rescale = scale_ref[0], scale_ref[1], scale_ref[2]
    tq = q_ref.shape[1]
    skv = k_ref.shape[1]

    # activation fake-quant -> integer codes (exactly representable in bf16);
    # dequant scales + 1/sqrt(hd) are folded into `rescale` on the f32 accumulator.
    cq = jnp.round(jnp.clip(q_ref[0], -clip_val, clip_val) * s_q)
    ck = jnp.round(jnp.clip(k_ref[0], -clip_val, clip_val) * s_k)
    cq = jnp.transpose(cq.reshape(tq, num_heads, head_dim), (1, 0, 2)).astype(jnp.bfloat16)
    ck = jnp.transpose(ck.reshape(skv, num_heads, head_dim), (1, 0, 2)).astype(jnp.bfloat16)

    scores = jnp.einsum('hqd,hkd->hqk', cq, ck,
                        preferred_element_type=jnp.float32)    # one batched MXU contraction
    scores = scores * rescale + mask_ref[0, 0]                 # (NH,tq,S) + (1,S)
    scores_ref[0] = scores                                     # layer_att tile

    m = jnp.max(scores, axis=-1, keepdims=True)
    e = jnp.exp(scores - m)
    probs = e * pl.reciprocal(jnp.sum(e, axis=-1, keepdims=True), approx=True)
    probs_ref[0] = probs                                       # layer_probs tile (pre-quant)
    pmax_ref[...] = jnp.full((1, 1, 1, 128), jnp.max(probs), jnp.float32)


# ------------------------- kernel 3: context = probs_q @ V_q ------------------------------
def _context_kernel(scale_ref, probs_ref, v_ref, ctx_ref, pmax_ref,
                    *, num_heads, head_dim, clip_val):
    s_p, s_v, rescale = scale_ref[0], scale_ref[1], scale_ref[2]
    skv = v_ref.shape[1]
    p = probs_ref[0]                                           # (NH, tq, S)
    tq = p.shape[1]

    cp = jnp.round(jnp.clip(p, -clip_val, clip_val) * s_p).astype(jnp.bfloat16)
    cv = jnp.round(jnp.clip(v_ref[0], -clip_val, clip_val) * s_v)
    cv = jnp.transpose(cv.reshape(skv, num_heads, head_dim), (1, 0, 2)).astype(jnp.bfloat16)

    ctx = jnp.einsum('hqk,hkd->hqd', cp, cv,
                     preferred_element_type=jnp.float32) * rescale
    # merge heads -> lane-dense (tq, H) store; (B, NH, S, HD) view rebuilt in the wrapper.
    merged = jnp.transpose(ctx, (1, 0, 2)).reshape(tq, num_heads * head_dim)
    ctx_ref[0] = merged
    pmax_ref[...] = jnp.full((1, 1, 1, 128), jnp.max(jnp.abs(merged)), jnp.float32)


# ------------------ kernel 4: output dense + residual + LayerNorm -------------------------
def _output_kernel(scale_ref, ctx_ref, x_ref, wo_ref, bo_ref, gamma_ref, beta_ref,
                   attn_out_ref, selfout_ref, *, clip_val, ln_eps):
    s_c, inv_s_c = scale_ref[0], scale_ref[1]
    cc = jnp.round(jnp.clip(ctx_ref[0], -clip_val, clip_val) * s_c).astype(jnp.bfloat16)
    so = jnp.dot(cc, wo_ref[...], preferred_element_type=jnp.float32) * inv_s_c + bo_ref[...]
    selfout_ref[0] = so                                        # self_output_hs tile

    hid = so + x_ref[0]                                        # dropout = identity (inference)
    mu = jnp.mean(hid, axis=-1, keepdims=True)
    var = jnp.mean(jnp.square(hid - mu), axis=-1, keepdims=True)
    normed = (hid - mu) * lax.rsqrt(var + ln_eps)
    attn_out_ref[0] = gamma_ref[...] * normed + beta_ref[...]


def bert_attention(hidden_states, attention_mask, params, *, num_heads,
                   clip_val=2.5, input_bits=8, ln_eps=1e-12, q_block=None):
    B, S, H = hidden_states.shape
    assert H % num_heads == 0
    HD = H // num_heads
    assert attention_mask.shape == (B, 1, 1, S)

    if q_block is None:
        q_block = S if (S <= 128 or S % 128 != 0) else 128
    assert S % q_block == 0
    nqb = S // q_block
    levels = 2.0 ** (input_bits - 1) - 1.0

    cparams = pltpu.CompilerParams(
        dimension_semantics=("parallel", "parallel"),   # megacore sharding on v7x
        vmem_limit_bytes=_VMEM_LIMIT)

    grid = (B, nqb)
    row_spec = pl.BlockSpec((1, q_block, H), lambda b, qi: (b, qi, 0))
    full_row_spec = pl.BlockSpec((1, S, H), lambda b, qi: (b, 0, 0))
    w_spec = pl.BlockSpec((H, H), lambda b, qi: (0, 0))
    vec_spec = pl.BlockSpec((1, H), lambda b, qi: (0, 0))
    mask_spec = pl.BlockSpec((1, 1, 1, S), lambda b, qi: (b, 0, 0, 0))
    att_spec = pl.BlockSpec((1, num_heads, q_block, S), lambda b, qi: (b, 0, qi, 0))
    pmax1_spec = pl.BlockSpec((1, 1, 1, 128), lambda b, qi: (b, qi, 0, 0))
    pmax3_spec = pl.BlockSpec((1, 1, 3, 128), lambda b, qi: (b, qi, 0, 0))
    smem_spec = pl.BlockSpec(memory_space=pltpu.MemorySpace.SMEM)

    # ---- 1) fused Q/K/V projection (bf16 MXU, f32 accum) + per-block |.|max partials ----
    q, k, v, qkv_pmax = pl.pallas_call(
        _qkv_proj_kernel,
        grid=grid,
        in_specs=[row_spec, w_spec, vec_spec, w_spec, vec_spec, w_spec, vec_spec],
        out_specs=(row_spec, row_spec, row_spec, pmax3_spec),
        out_shape=(jax.ShapeDtypeStruct((B, S, H), jnp.float32),
                   jax.ShapeDtypeStruct((B, S, H), jnp.float32),
                   jax.ShapeDtypeStruct((B, S, H), jnp.float32),
                   jax.ShapeDtypeStruct((B, nqb, 3, 128), jnp.float32)),
        compiler_params=cparams,
    )(hidden_states, params['wq'], params['bq'], params['wk'], params['bk'],
      params['wv'], params['bv'])

    # per-tensor activation-quant scales (tiny reduction over the per-block partials)
    def act_scale(max_abs):
        return levels / jnp.maximum(jnp.minimum(max_abs, clip_val), _EPS)

    s_q = act_scale(jnp.max(qkv_pmax[:, :, 0, :]))
    s_k = act_scale(jnp.max(qkv_pmax[:, :, 1, :]))
    s_v = act_scale(jnp.max(qkv_pmax[:, :, 2, :]))
    qk_scales = jnp.stack([s_q, s_k, 1.0 / (s_q * s_k * math.sqrt(HD))])

    # ---- 2) attention scores + softmax ----
    scores, probs, p_pmax = pl.pallas_call(
        functools.partial(_attn_scores_kernel, num_heads=num_heads,
                          head_dim=HD, clip_val=clip_val),
        grid=grid,
        in_specs=[smem_spec, row_spec, full_row_spec, mask_spec],
        out_specs=(att_spec, att_spec, pmax1_spec),
        out_shape=(jax.ShapeDtypeStruct((B, num_heads, S, S), jnp.float32),
                   jax.ShapeDtypeStruct((B, num_heads, S, S), jnp.float32),
                   jax.ShapeDtypeStruct((B, nqb, 1, 128), jnp.float32)),
        compiler_params=cparams,
    )(qk_scales, q, k, attention_mask)

    s_p = act_scale(jnp.max(p_pmax))
    pv_scales = jnp.stack([s_p, s_v, 1.0 / (s_p * s_v)])

    # ---- 3) context = quant(probs) @ quant(V), lane-dense merged-head output ----
    ctx_merged, c_pmax = pl.pallas_call(
        functools.partial(_context_kernel, num_heads=num_heads,
                          head_dim=HD, clip_val=clip_val),
        grid=grid,
        in_specs=[smem_spec, att_spec, full_row_spec],
        out_specs=(row_spec, pmax1_spec),
        out_shape=(jax.ShapeDtypeStruct((B, S, H), jnp.float32),
                   jax.ShapeDtypeStruct((B, nqb, 1, 128), jnp.float32)),
        compiler_params=cparams,
    )(pv_scales, probs, v)

    s_c = act_scale(jnp.max(c_pmax))
    c_scales = jnp.stack([s_c, 1.0 / s_c])

    # ---- 4) output dense (act+weight fake-quant) + residual + LayerNorm ----
    attention_output, self_output_hs = pl.pallas_call(
        functools.partial(_output_kernel, clip_val=clip_val, ln_eps=ln_eps),
        grid=grid,
        in_specs=[smem_spec, row_spec, row_spec, w_spec, vec_spec, vec_spec, vec_spec],
        out_specs=(row_spec, row_spec),
        out_shape=(jax.ShapeDtypeStruct((B, S, H), jnp.float32),
                   jax.ShapeDtypeStruct((B, S, H), jnp.float32)),
        compiler_params=cparams,
    )(c_scales, ctx_merged, hidden_states, params['wo'], params['bo'],
      params['gamma'], params['beta'])

    # layer_context in the module's (B, NH, S, HD) layout (pure layout plumbing).
    layer_context = ctx_merged.reshape(B, S, num_heads, HD).transpose(0, 2, 1, 3)

    return attention_output, scores, probs, layer_context, self_output_hs


if __name__ == "__main__":
    B, S, H, NH = 2, 8, 32, 4

    key = jax.random.PRNGKey(0)
    ks = jax.random.split(key, 10)

    def init(k, shape, scale=0.02):
        return scale * jax.random.normal(k, shape, jnp.float32)

    # PyTorch nn.Linear weights are (out, in); pass transposed (in, out) to the kernel.
    raw_params = {
        'wq': init(ks[0], (H, H)).T, 'bq': init(ks[1], (1, H)),
        'wk': init(ks[2], (H, H)).T, 'bk': init(ks[3], (1, H)),
        'wv': init(ks[4], (H, H)).T, 'bv': init(ks[5], (1, H)),
        'wo': init(ks[6], (H, H)).T, 'bo': init(ks[7], (1, H)),
        'gamma': jnp.ones((1, H), jnp.float32),   # LayerNorm weight
        'beta': jnp.zeros((1, H), jnp.float32),   # LayerNorm bias
    }
    params = prepare_params(raw_params, weight_bits=8)   # weight fake-quant hoisted

    hidden_states = jax.random.normal(ks[8], (B, S, H), jnp.float32)

    # BERT-style extended additive mask: mask out the last 2 tokens of batch 1.
    valid = jnp.ones((B, S), jnp.float32).at[1, -2:].set(0.0)
    attention_mask = (1.0 - valid)[:, None, None, :] * -10000.0   # (B, 1, 1, S)

    fn = jax.jit(functools.partial(bert_attention, num_heads=NH, clip_val=2.5,
                                   input_bits=8, ln_eps=1e-12))
    outs = jax.block_until_ready(fn(hidden_states, attention_mask, params))

    attention_output, layer_att, layer_probs, layer_context, self_output_hs = outs
    assert attention_output.shape == (B, S, H)
    assert layer_att.shape == (B, NH, S, S)
    assert layer_probs.shape == (B, NH, S, S)
    assert layer_context.shape == (B, NH, S, H // NH)
    assert self_output_hs.shape == (B, S, H)
    assert all(bool(jnp.all(jnp.isfinite(o))) for o in outs)

    print("KERNEL_OK")
</pallas_src>

<mosaic_0001>
module attributes {stable_mosaic.version = 11 : i64} {
  func.func @_attn_scores_kernel(%arg0: i32, %arg1: i32, %arg2: memref<3xf32, #tpu.memory_space<smem>>, %arg3: memref<1x8x32xf32, #tpu.memory_space<vmem>>, %arg4: memref<1x8x32xf32, #tpu.memory_space<vmem>>, %arg5: memref<1x1x1x8xf32, #tpu.memory_space<vmem>>, %arg6: memref<1x4x8x8xf32, #tpu.memory_space<vmem>>, %arg7: memref<1x4x8x8xf32, #tpu.memory_space<vmem>>, %arg8: memref<1x1x1x128xf32, #tpu.memory_space<vmem>>) attributes {dimension_semantics = [#tpu.dimension_semantics<parallel>, #tpu.dimension_semantics<parallel>], iteration_bounds = array<i64: 2, 1>, scalar_prefetch = 0 : i64, scratch_operands = 0 : i64, tpu.core_type = #tpu.core_type<tc>, window_params = [{transform_indices = @transform_0, window_bounds = array<i64: 3>}, {transform_indices = @transform_1, window_bounds = array<i64: 1, 8, 32>}, {transform_indices = @transform_2, window_bounds = array<i64: 1, 8, 32>}, {transform_indices = @transform_3, window_bounds = array<i64: 1, 1, 1, 8>}, {transform_indices = @transform_4, window_bounds = array<i64: 1, 4, 8, 8>}, {transform_indices = @transform_5, window_bounds = array<i64: 1, 4, 8, 8>}, {transform_indices = @transform_6, window_bounds = array<i64: 1, 1, 1, 128>}]} {
    %c0 = arith.constant 0 : index
    %0 = memref.load %arg2[%c0] : memref<3xf32, #tpu.memory_space<smem>>
    %c1 = arith.constant 1 : index
    %1 = memref.load %arg2[%c1] : memref<3xf32, #tpu.memory_space<smem>>
    %c2 = arith.constant 2 : index
    %2 = memref.load %arg2[%c2] : memref<3xf32, #tpu.memory_space<smem>>
    %c0_0 = arith.constant 0 : index
    %c0_1 = arith.constant 0 : index
    %c0_2 = arith.constant 0 : index
    %3 = vector.load %arg3[%c0_0, %c0_1, %c0_2] : memref<1x8x32xf32, #tpu.memory_space<vmem>>, vector<1x8x32xf32>
    %4 = vector.shape_cast %3 : vector<1x8x32xf32> to vector<8x32xf32>
    %cst = arith.constant -2.500000e+00 : f32
    %cst_3 = arith.constant 2.500000e+00 : f32
    %5 = vector.broadcast %cst : f32 to vector<8x32xf32>
    %6 = arith.maximumf %5, %4 : vector<8x32xf32>
    %7 = vector.broadcast %cst_3 : f32 to vector<8x32xf32>
    %8 = arith.minimumf %7, %6 : vector<8x32xf32>
    %9 = vector.broadcast %0 : f32 to vector<8x32xf32>
    %10 = arith.mulf %8, %9 : vector<8x32xf32>
    %11 = math.roundeven %10 : vector<8x32xf32>
    %c0_4 = arith.constant 0 : index
    %c0_5 = arith.constant 0 : index
    %c0_6 = arith.constant 0 : index
    %12 = vector.load %arg4[%c0_4, %c0_5, %c0_6] : memref<1x8x32xf32, #tpu.memory_space<vmem>>, vector<1x8x32xf32>
    %13 = vector.shape_cast %12 : vector<1x8x32xf32> to vector<8x32xf32>
    %cst_7 = arith.constant -2.500000e+00 : f32
    %cst_8 = arith.constant 2.500000e+00 : f32
    %14 = vector.broadcast %cst_7 : f32 to vector<8x32xf32>
    %15 = arith.maximumf %14, %13 : vector<8x32xf32>
    %16 = vector.broadcast %cst_8 : f32 to vector<8x32xf32>
    %17 = arith.minimumf %16, %15 : vector<8x32xf32>
    %18 = vector.broadcast %1 : f32 to vector<8x32xf32>
    %19 = arith.mulf %17, %18 : vector<8x32xf32>
    %20 = math.roundeven %19 : vector<8x32xf32>
    %21 = vector.shape_cast %11 : vector<8x32xf32> to vector<8x4x8xf32>
    %22 = tpu.transpose %21, [1, 0, 2] : vector<8x4x8xf32> -> vector<4x8x8xf32>
    %23 = arith.truncf %22 : vector<4x8x8xf32> to vector<4x8x8xbf16>
    %24 = vector.shape_cast %20 : vector<8x32xf32> to vector<8x4x8xf32>
    %25 = tpu.transpose %24, [1, 0, 2] : vector<8x4x8xf32> -> vector<4x8x8xf32>
    %26 = arith.truncf %25 : vector<4x8x8xf32> to vector<4x8x8xbf16>
    "tpu.trace_start"() <{level = 10 : i32, message = "hqd,hkd->hqk"}> : () -> ()
    %cst_9 = arith.constant dense<0.000000e+00> : vector<4x8x8xf32>
    %27 = tpu.matmul %23, %26, %cst_9 {dimension_numbers = #tpu.dot_dimension_numbers<[2], [2], [1], [1], [0, 0, 0, 1, 1, 1], [0], [0]>} : vector<4x8x8xbf16>, vector<4x8x8xbf16>, vector<4x8x8xf32> -> vector<4x8x8xf32>
    "tpu.trace_stop"() : () -> ()
    %28 = vector.broadcast %2 : f32 to vector<4x8x8xf32>
    %29 = arith.mulf %27, %28 : vector<4x8x8xf32>
    %c0_10 = arith.constant 0 : index
    %c0_11 = arith.constant 0 : index
    %c0_12 = arith.constant 0 : index
    %c0_13 = arith.constant 0 : index
    %30 = vector.load %arg5[%c0_10, %c0_11, %c0_12, %c0_13] : memref<1x1x1x8xf32, #tpu.memory_space<vmem>>, vector<1x1x1x8xf32>
    %31 = vector.shape_cast %30 : vector<1x1x1x8xf32> to vector<1x8xf32>
    %32 = vector.shape_cast %31 : vector<1x8xf32> to vector<1x1x8xf32>
    %33 = vector.broadcast %32 : vector<1x1x8xf32> to vector<4x8x8xf32>
    %34 = arith.addf %29, %33 : vector<4x8x8xf32>
    %c0_14 = arith.constant 0 : index
    %c0_15 = arith.constant 0 : index
    %c0_16 = arith.constant 0 : index
    %c0_17 = arith.constant 0 : index
    %35 = vector.load %arg6[%c0_14, %c0_15, %c0_16, %c0_17] : memref<1x4x8x8xf32, #tpu.memory_space<vmem>>, vector<1x4x8x8xf32>
    %36 = vector.shape_cast %35 : vector<1x4x8x8xf32> to vector<4x8x8xf32>
    %37 = vector.shape_cast %34 : vector<4x8x8xf32> to vector<1x4x8x8xf32>
    tpu.vector_store %arg6[%c0_14, %c0_15, %c0_16, %c0_17], %37 {strides = array<i32>} : memref<1x4x8x8xf32, #tpu.memory_space<vmem>>, vector<1x4x8x8xf32>,
    %cst_18 = arith.constant dense<0xFF800000> : vector<4x8xf32>
    %38 = vector.multi_reduction <maximumf>, %34, %cst_18 [2] : vector<4x8x8xf32> to vector<4x8xf32>
    %39 = vector.shape_cast %38 : vector<4x8xf32> to vector<4x8x1xf32>
    %40 = vector.broadcast %39 : vector<4x8x1xf32> to vector<4x8x8xf32>
    %41 = arith.subf %34, %40 : vector<4x8x8xf32>
    %42 = math.exp %41 : vector<4x8x8xf32>
    %cst_19 = arith.constant dense<0.000000e+00> : vector<4x8xf32>
    %43 = vector.multi_reduction <add>, %42, %cst_19 [2] : vector<4x8x8xf32> to vector<4x8xf32>
    %44 = vector.shape_cast %43 : vector<4x8xf32> to vector<4x8x1xf32>
    %45 = tpu.reciprocal %44 {approx = true} : vector<4x8x1xf32> -> vector<4x8x1xf32>
    %46 = vector.broadcast %45 : vector<4x8x1xf32> to vector<4x8x8xf32>
    %47 = arith.mulf %42, %46 : vector<4x8x8xf32>
    %c0_20 = arith.constant 0 : index
    %c0_21 = arith.constant 0 : index
    %c0_22 = arith.constant 0 : index
    %c0_23 = arith.constant 0 : index
    %48 = vector.load %arg7[%c0_20, %c0_21, %c0_22, %c0_23] : memref<1x4x8x8xf32, #tpu.memory_space<vmem>>, vector<1x4x8x8xf32>
    %49 = vector.shape_cast %48 : vector<1x4x8x8xf32> to vector<4x8x8xf32>
    %50 = vector.shape_cast %47 : vector<4x8x8xf32> to vector<1x4x8x8xf32>
    tpu.vector_store %arg7[%c0_20, %c0_21, %c0_22, %c0_23], %50 {strides = array<i32>} : memref<1x4x8x8xf32, #tpu.memory_space<vmem>>, vector<1x4x8x8xf32>,
    %51 = vector.shape_cast %47 : vector<4x8x8xf32> to vector<1x4x8x8xf32>
    %cst_24 = arith.constant dense<0xFF800000> : vector<1xf32>
    %52 = vector.multi_reduction <maximumf>, %51, %cst_24 [1, 2, 3] : vector<1x4x8x8xf32> to vector<1xf32>
    %53 = vector.shape_cast %52 : vector<1xf32> to vector<1x1x1x1xf32>
    %54 = vector.extract %53[0, 0, 0, 0] : f32 from vector<1x1x1x1xf32>
    %55 = vector.broadcast %54 : f32 to vector<1x1x1x128xf32>
    %c0_25 = arith.constant 0 : index
    %c0_26 = arith.constant 0 : index
    %c0_27 = arith.constant 0 : index
    %c0_28 = arith.constant 0 : index
    %56 = vector.load %arg8[%c0_25, %c0_26, %c0_27, %c0_28] : memref<1x1x1x128xf32, #tpu.memory_space<vmem>>, vector<1x1x1x128xf32>
    tpu.vector_store %arg8[%c0_25, %c0_26, %c0_27, %c0_28], %55 {strides = array<i32>} : memref<1x1x1x128xf32, #tpu.memory_space<vmem>>, vector<1x1x1x128xf32>,
    return
  }
  func.func @transform_0(%arg0: i32, %arg1: i32) -> i32 {
    %c0_i32 = arith.constant 0 : i32
    %c0_i32_0 = arith.constant 0 : i32
    return %c0_i32 : i32
  }
  func.func @transform_1(%arg0: i32, %arg1: i32) -> (i32, i32, i32) {
    %c0_i32 = arith.constant 0 : i32
    %c0_i32_0 = arith.constant 0 : i32
    return %arg0, %arg1, %c0_i32 : i32, i32, i32
  }
  func.func @transform_2(%arg0: i32, %arg1: i32) -> (i32, i32, i32) {
    %c0_i32 = arith.constant 0 : i32
    %c0_i32_0 = arith.constant 0 : i32
    %c0_i32_1 = arith.constant 0 : i32
    return %arg0, %c0_i32, %c0_i32_0 : i32, i32, i32
  }
  func.func @transform_3(%arg0: i32, %arg1: i32) -> (i32, i32, i32, i32) {
    %c0_i32 = arith.constant 0 : i32
    %c0_i32_0 = arith.constant 0 : i32
    %c0_i32_1 = arith.constant 0 : i32
    %c0_i32_2 = arith.constant 0 : i32
    return %arg0, %c0_i32, %c0_i32_0, %c0_i32_1 : i32, i32, i32, i32
  }
  func.func @transform_4(%arg0: i32, %arg1: i32) -> (i32, i32, i32, i32) {
    %c0_i32 = arith.constant 0 : i32
    %c0_i32_0 = arith.constant 0 : i32
    %c0_i32_1 = arith.constant 0 : i32
    return %arg0, %c0_i32, %arg1, %c0_i32_0 : i32, i32, i32, i32
  }
  func.func @transform_5(%arg0: i32, %arg1: i32) -> (i32, i32, i32, i32) {
    %c0_i32 = arith.constant 0 : i32
    %c0_i32_0 = arith.constant 0 : i32
    %c0_i32_1 = arith.constant 0 : i32
    return %arg0, %c0_i32, %arg1, %c0_i32_0 : i32, i32, i32, i32
  }
  func.func @transform_6(%arg0: i32, %arg1: i32) -> (i32, i32, i32, i32) {
    %c0_i32 = arith.constant 0 : i32
    %c0_i32_0 = arith.constant 0 : i32
    %c0_i32_1 = arith.constant 0 : i32
    return %arg0, %arg1, %c0_i32, %c0_i32_0 : i32, i32, i32, i32
  }
}

module attributes {stable_mosaic.version = 11 : i64} {
  func.func @_qkv_proj_kernel(%arg0: i32, %arg1: i32, %arg2: memref<1x8x32xf32, #tpu.memory_space<vmem>>, %arg3: memref<32x32xbf16, #tpu.memory_space<vmem>>, %arg4: memref<1x32xf32, #tpu.memory_space<vmem>>, %arg5: memref<32x32xbf16, #tpu.memory_space<vmem>>, %arg6: memref<1x32xf32, #tpu.memory_space<vmem>>, %arg7: memref<32x32xbf16, #tpu.memory_space<vmem>>, %arg8: memref<1x32xf32, #tpu.memory_space<vmem>>, %arg9: memref<1x8x32xf32, #tpu.memory_space<vmem>>, %arg10: memref<1x8x32xf32, #tpu.memory_space<vmem>>, %arg11: memref<1x8x32xf32, #tpu.memory_space<vmem>>, %arg12: memref<1x1x3x128xf32, #tpu.memory_space<vmem>>) attributes {dimension_semantics = [#tpu.dimension_semantics<parallel>, #tpu.dimension_semantics<parallel>], iteration_bounds = array<i64: 2, 1>, scalar_prefetch = 0 : i64, scratch_operands = 0 : i64, tpu.core_type = #tpu.core_type<tc>, window_params = [{transform_indices = @transform_0, window_bounds = array<i64: 1, 8, 32>}, {pipeline_mode = #tpu.pipeline_mode<synchronous>, transform_indices = @transform_1, window_bounds = array<i64: 32, 32>}, {pipeline_mode = #tpu.pipeline_mode<synchronous>, transform_indices = @transform_2, window_bounds = array<i64: 1, 32>}, {pipeline_mode = #tpu.pipeline_mode<synchronous>, transform_indices = @transform_3, window_bounds = array<i64: 32, 32>}, {pipeline_mode = #tpu.pipeline_mode<synchronous>, transform_indices = @transform_4, window_bounds = array<i64: 1, 32>}, {pipeline_mode = #tpu.pipeline_mode<synchronous>, transform_indices = @transform_5, window_bounds = array<i64: 32, 32>}, {pipeline_mode = #tpu.pipeline_mode<synchronous>, transform_indices = @transform_6, window_bounds = array<i64: 1, 32>}, {transform_indices = @transform_7, window_bounds = array<i64: 1, 8, 32>}, {transform_indices = @transform_8, window_bounds = array<i64: 1, 8, 32>}, {transform_indices = @transform_9, window_bounds = array<i64: 1, 8, 32>}, {transform_indices = @transform_10, window_bounds = array<i64: 1, 1, 3, 128>}]} {
    %c0 = arith.constant 0 : index
    %c0_0 = arith.constant 0 : index
    %c0_1 = arith.constant 0 : index
    %0 = vector.load %arg2[%c0, %c0_0, %c0_1] : memref<1x8x32xf32, #tpu.memory_space<vmem>>, vector<1x8x32xf32>
    %1 = vector.shape_cast %0 : vector<1x8x32xf32> to vector<8x32xf32>
    %2 = arith.truncf %1 : vector<8x32xf32> to vector<8x32xbf16>
    %c0_2 = arith.constant 0 : index
    %c0_3 = arith.constant 0 : index
    %3 = vector.load %arg3[%c0_2, %c0_3] : memref<32x32xbf16, #tpu.memory_space<vmem>>, vector<32x32xbf16>
    %cst = arith.constant dense<0.000000e+00> : vector<8x32xf32>
    %4 = tpu.matmul %2, %3, %cst {dimension_numbers = #tpu.dot_dimension_numbers<[1], [0], [0], [1], [0, 0, 1, 1], [], []>} : vector<8x32xbf16>, vector<32x32xbf16>, vector<8x32xf32> -> vector<8x32xf32>
    %c0_4 = arith.constant 0 : index
    %c0_5 = arith.constant 0 : index
    %5 = vector.load %arg4[%c0_4, %c0_5] : memref<1x32xf32, #tpu.memory_space<vmem>>, vector<1x32xf32>
    %6 = vector.broadcast %5 : vector<1x32xf32> to vector<8x32xf32>
    %7 = arith.addf %4, %6 : vector<8x32xf32>
    %c0_6 = arith.constant 0 : index
    %c0_7 = arith.constant 0 : index
    %c0_8 = arith.constant 0 : index
    %8 = vector.load %arg9[%c0_6, %c0_7, %c0_8] : memref<1x8x32xf32, #tpu.memory_space<vmem>>, vector<1x8x32xf32>
    %9 = vector.shape_cast %8 : vector<1x8x32xf32> to vector<8x32xf32>
    %10 = vector.shape_cast %7 : vector<8x32xf32> to vector<1x8x32xf32>
    tpu.vector_store %arg9[%c0_6, %c0_7, %c0_8], %10 {strides = array<i32>} : memref<1x8x32xf32, #tpu.memory_space<vmem>>, vector<1x8x32xf32>,
    %11 = math.absf %7 : vector<8x32xf32>
    %12 = vector.shape_cast %11 : vector<8x32xf32> to vector<1x8x32xf32>
    %cst_9 = arith.constant dense<0xFF800000> : vector<1xf32>
    %13 = vector.multi_reduction <maximumf>, %12, %cst_9 [1, 2] : vector<1x8x32xf32> to vector<1xf32>
    %14 = vector.shape_cast %13 : vector<1xf32> to vector<1x1x1xf32>
    %15 = vector.extract %14[0, 0, 0] : f32 from vector<1x1x1xf32>
    %c0_10 = arith.constant 0 : index
    %c0_11 = arith.constant 0 : index
    %16 = vector.load %arg5[%c0_10, %c0_11] : memref<32x32xbf16, #tpu.memory_space<vmem>>, vector<32x32xbf16>
    %cst_12 = arith.constant dense<0.000000e+00> : vector<8x32xf32>
    %17 = tpu.matmul %2, %16, %cst_12 {dimension_numbers = #tpu.dot_dimension_numbers<[1], [0], [0], [1], [0, 0, 1, 1], [], []>} : vector<8x32xbf16>, vector<32x32xbf16>, vector<8x32xf32> -> vector<8x32xf32>
    %c0_13 = arith.constant 0 : index
    %c0_14 = arith.constant 0 : index
    %18 = vector.load %arg6[%c0_13, %c0_14] : memref<1x32xf32, #tpu.memory_space<vmem>>, vector<1x32xf32>
    %19 = vector.broadcast %18 : vector<1x32xf32> to vector<8x32xf32>
    %20 = arith.addf %17, %19 : vector<8x32xf32>
    %c0_15 = arith.constant 0 : index
    %c0_16 = arith.constant 0 : index
    %c0_17 = arith.constant 0 : index
    %21 = vector.load %arg10[%c0_15, %c0_16, %c0_17] : memref<1x8x32xf32, #tpu.memory_space<vmem>>, vector<1x8x32xf32>
    %22 = vector.shape_cast %21 : vector<1x8x32xf32> to vector<8x32xf32>
    %23 = vector.shape_cast %20 : vector<8x32xf32> to vector<1x8x32xf32>
    tpu.vector_store %arg10[%c0_15, %c0_16, %c0_17], %23 {strides = array<i32>} : memref<1x8x32xf32, #tpu.memory_space<vmem>>, vector<1x8x32xf32>,
    %24 = math.absf %20 : vector<8x32xf32>
    %25 = vector.shape_cast %24 : vector<8x32xf32> to vector<1x8x32xf32>
    %cst_18 = arith.constant dense<0xFF800000> : vector<1xf32>
    %26 = vector.multi_reduction <maximumf>, %25, %cst_18 [1, 2] : vector<1x8x32xf32> to vector<1xf32>
    %27 = vector.shape_cast %26 : vector<1xf32> to vector<1x1x1xf32>
    %28 = vector.extract %27[0, 0, 0] : f32 from vector<1x1x1xf32>
    %c0_19 = arith.constant 0 : index
    %c0_20 = arith.constant 0 : index
    %29 = vector.load %arg7[%c0_19, %c0_20] : memref<32x32xbf16, #tpu.memory_space<vmem>>, vector<32x32xbf16>
    %cst_21 = arith.constant dense<0.000000e+00> : vector<8x32xf32>
    %30 = tpu.matmul %2, %29, %cst_21 {dimension_numbers = #tpu.dot_dimension_numbers<[1], [0], [0], [1], [0, 0, 1, 1], [], []>} : vector<8x32xbf16>, vector<32x32xbf16>, vector<8x32xf32> -> vector<8x32xf32>
    %c0_22 = arith.constant 0 : index
    %c0_23 = arith.constant 0 : index
    %31 = vector.load %arg8[%c0_22, %c0_23] : memref<1x32xf32, #tpu.memory_space<vmem>>, vector<1x32xf32>
    %32 = vector.broadcast %31 : vector<1x32xf32> to vector<8x32xf32>
    %33 = arith.addf %30, %32 : vector<8x32xf32>
    %c0_24 = arith.constant 0 : index
    %c0_25 = arith.constant 0 : index
    %c0_26 = arith.constant 0 : index
    %34 = vector.load %arg11[%c0_24, %c0_25, %c0_26] : memref<1x8x32xf32, #tpu.memory_space<vmem>>, vector<1x8x32xf32>
    %35 = vector.shape_cast %34 : vector<1x8x32xf32> to vector<8x32xf32>
    %36 = vector.shape_cast %33 : vector<8x32xf32> to vector<1x8x32xf32>
    tpu.vector_store %arg11[%c0_24, %c0_25, %c0_26], %36 {strides = array<i32>} : memref<1x8x32xf32, #tpu.memory_space<vmem>>, vector<1x8x32xf32>,
    %37 = math.absf %33 : vector<8x32xf32>
    %38 = vector.shape_cast %37 : vector<8x32xf32> to vector<1x8x32xf32>
    %cst_27 = arith.constant dense<0xFF800000> : vector<1xf32>
    %39 = vector.multi_reduction <maximumf>, %38, %cst_27 [1, 2] : vector<1x8x32xf32> to vector<1xf32>
    %40 = vector.shape_cast %39 : vector<1xf32> to vector<1x1x1xf32>
    %41 = vector.extract %40[0, 0, 0] : f32 from vector<1x1x1xf32>
    %42 = vector.broadcast %15 : f32 to vector<1x1x1x128xf32>
    %43 = vector.broadcast %28 : f32 to vector<1x1x1x128xf32>
    %44 = vector.broadcast %41 : f32 to vector<1x1x1x128xf32>
    %45 = tpu.concatenate %42, %43, %44 in 2 : vector<1x1x1x128xf32>, vector<1x1x1x128xf32>, vector<1x1x1x128xf32> -> vector<1x1x3x128xf32>
    %c0_28 = arith.constant 0 : index
    %c0_29 = arith.constant 0 : index
    %c0_30 = arith.constant 0 : index
    %c0_31 = arith.constant 0 : index
    %46 = vector.load %arg12[%c0_28, %c0_29, %c0_30, %c0_31] : memref<1x1x3x128xf32, #tpu.memory_space<vmem>>, vector<1x1x3x128xf32>
    tpu.vector_store %arg12[%c0_28, %c0_29, %c0_30, %c0_31], %45 {strides = array<i32>} : memref<1x1x3x128xf32, #tpu.memory_space<vmem>>, vector<1x1x3x128xf32>,
    return
  }
  func.func @transform_0(%arg0: i32, %arg1: i32) -> (i32, i32, i32) {
    %c0_i32 = arith.constant 0 : i32
    %c0_i32_0 = arith.constant 0 : i32
    return %arg0, %arg1, %c0_i32 : i32, i32, i32
  }
  func.func @transform_1(%arg0: i32, %arg1: i32) -> (i32, i32) {
    %c0_i32 = arith.constant 0 : i32
    %c0_i32_0 = arith.constant 0 : i32
    %c0_i32_1 = arith.constant 0 : i32
    return %c0_i32, %c0_i32_0 : i32, i32
  }
  func.func @transform_2(%arg0: i32, %arg1: i32) -> (i32, i32) {
    %c0_i32 = arith.constant 0 : i32
    %c0_i32_0 = arith.constant 0 : i32
    %c0_i32_1 = arith.constant 0 : i32
    return %c0_i32, %c0_i32_0 : i32, i32
  }
  func.func @transform_3(%arg0: i32, %arg1: i32) -> (i32, i32) {
    %c0_i32 = arith.constant 0 : i32
    %c0_i32_0 = arith.constant 0 : i32
    %c0_i32_1 = arith.constant 0 : i32
    return %c0_i32, %c0_i32_0 : i32, i32
  }
  func.func @transform_4(%arg0: i32, %arg1: i32) -> (i32, i32) {
    %c0_i32 = arith.constant 0 : i32
    %c0_i32_0 = arith.constant 0 : i32
    %c0_i32_1 = arith.constant 0 : i32
    return %c0_i32, %c0_i32_0 : i32, i32
  }
  func.func @transform_5(%arg0: i32, %arg1: i32) -> (i32, i32) {
    %c0_i32 = arith.constant 0 : i32
    %c0_i32_0 = arith.constant 0 : i32
    %c0_i32_1 = arith.constant 0 : i32
    return %c0_i32, %c0_i32_0 : i32, i32
  }
  func.func @transform_6(%arg0: i32, %arg1: i32) -> (i32, i32) {
    %c0_i32 = arith.constant 0 : i32
    %c0_i32_0 = arith.constant 0 : i32
    %c0_i32_1 = arith.constant 0 : i32
    return %c0_i32, %c0_i32_0 : i32, i32
  }
  func.func @transform_7(%arg0: i32, %arg1: i32) -> (i32, i32, i32) {
    %c0_i32 = arith.constant 0 : i32
    %c0_i32_0 = arith.constant 0 : i32
    return %arg0, %arg1, %c0_i32 : i32, i32, i32
  }
  func.func @transform_8(%arg0: i32, %arg1: i32) -> (i32, i32, i32) {
    %c0_i32 = arith.constant 0 : i32
    %c0_i32_0 = arith.constant 0 : i32
    return %arg0, %arg1, %c0_i32 : i32, i32, i32
  }
  func.func @transform_9(%arg0: i32, %arg1: i32) -> (i32, i32, i32) {
    %c0_i32 = arith.constant 0 : i32
    %c0_i32_0 = arith.constant 0 : i32
    return %arg0, %arg1, %c0_i32 : i32, i32, i32
  }
  func.func @transform_10(%arg0: i32, %arg1: i32) -> (i32, i32, i32, i32) {
    %c0_i32 = arith.constant 0 : i32
    %c0_i32_0 = arith.constant 0 : i32
    %c0_i32_1 = arith.constant 0 : i32
    return %arg0, %arg1, %c0_i32, %c0_i32_0 : i32, i32, i32, i32
  }
}

module attributes {stable_mosaic.version = 11 : i64} {
  func.func @_context_kernel(%arg0: i32, %arg1: i32, %arg2: memref<3xf32, #tpu.memory_space<smem>>, %arg3: memref<1x4x8x8xf32, #tpu.memory_space<vmem>>, %arg4: memref<1x8x32xf32, #tpu.memory_space<vmem>>, %arg5: memref<1x8x32xf32, #tpu.memory_space<vmem>>, %arg6: memref<1x1x1x128xf32, #tpu.memory_space<vmem>>) attributes {dimension_semantics = [#tpu.dimension_semantics<parallel>, #tpu.dimension_semantics<parallel>], iteration_bounds = array<i64: 2, 1>, scalar_prefetch = 0 : i64, scratch_operands = 0 : i64, tpu.core_type = #tpu.core_type<tc>, window_params = [{transform_indices = @transform_0, window_bounds = array<i64: 3>}, {transform_indices = @transform_1, window_bounds = array<i64: 1, 4, 8, 8>}, {transform_indices = @transform_2, window_bounds = array<i64: 1, 8, 32>}, {transform_indices = @transform_3, window_bounds = array<i64: 1, 8, 32>}, {transform_indices = @transform_4, window_bounds = array<i64: 1, 1, 1, 128>}]} {
    %c0 = arith.constant 0 : index
    %0 = memref.load %arg2[%c0] : memref<3xf32, #tpu.memory_space<smem>>
    %c1 = arith.constant 1 : index
    %1 = memref.load %arg2[%c1] : memref<3xf32, #tpu.memory_space<smem>>
    %c2 = arith.constant 2 : index
    %2 = memref.load %arg2[%c2] : memref<3xf32, #tpu.memory_space<smem>>
    %c0_0 = arith.constant 0 : index
    %c0_1 = arith.constant 0 : index
    %c0_2 = arith.constant 0 : index
    %c0_3 = arith.constant 0 : index
    %3 = vector.load %arg3[%c0_0, %c0_1, %c0_2, %c0_3] : memref<1x4x8x8xf32, #tpu.memory_space<vmem>>, vector<1x4x8x8xf32>
    %4 = vector.shape_cast %3 : vector<1x4x8x8xf32> to vector<4x8x8xf32>
    %cst = arith.constant -2.500000e+00 : f32
    %cst_4 = arith.constant 2.500000e+00 : f32
    %5 = vector.broadcast %cst : f32 to vector<4x8x8xf32>
    %6 = arith.maximumf %5, %4 : vector<4x8x8xf32>
    %7 = vector.broadcast %cst_4 : f32 to vector<4x8x8xf32>
    %8 = arith.minimumf %7, %6 : vector<4x8x8xf32>
    %9 = vector.broadcast %0 : f32 to vector<4x8x8xf32>
    %10 = arith.mulf %8, %9 : vector<4x8x8xf32>
    %11 = math.roundeven %10 : vector<4x8x8xf32>
    %12 = arith.truncf %11 : vector<4x8x8xf32> to vector<4x8x8xbf16>
    %c0_5 = arith.constant 0 : index
    %c0_6 = arith.constant 0 : index
    %c0_7 = arith.constant 0 : index
    %13 = vector.load %arg4[%c0_5, %c0_6, %c0_7] : memref<1x8x32xf32, #tpu.memory_space<vmem>>, vector<1x8x32xf32>
    %14 = vector.shape_cast %13 : vector<1x8x32xf32> to vector<8x32xf32>
    %cst_8 = arith.constant -2.500000e+00 : f32
    %cst_9 = arith.constant 2.500000e+00 : f32
    %15 = vector.broadcast %cst_8 : f32 to vector<8x32xf32>
    %16 = arith.maximumf %15, %14 : vector<8x32xf32>
    %17 = vector.broadcast %cst_9 : f32 to vector<8x32xf32>
    %18 = arith.minimumf %17, %16 : vector<8x32xf32>
    %19 = vector.broadcast %1 : f32 to vector<8x32xf32>
    %20 = arith.mulf %18, %19 : vector<8x32xf32>
    %21 = math.roundeven %20 : vector<8x32xf32>
    %22 = vector.shape_cast %21 : vector<8x32xf32> to vector<8x4x8xf32>
    %23 = tpu.transpose %22, [1, 0, 2] : vector<8x4x8xf32> -> vector<4x8x8xf32>
    %24 = arith.truncf %23 : vector<4x8x8xf32> to vector<4x8x8xbf16>
    "tpu.trace_start"() <{level = 10 : i32, message = "hqk,hkd->hqd"}> : () -> ()
    %cst_10 = arith.constant dense<0.000000e+00> : vector<4x8x8xf32>
    %25 = tpu.matmul %12, %24, %cst_10 {dimension_numbers = #tpu.dot_dimension_numbers<[2], [1], [1], [2], [0, 0, 0, 1, 1, 2], [0], [0]>} : vector<4x8x8xbf16>, vector<4x8x8xbf16>, vector<4x8x8xf32> -> vector<4x8x8xf32>
    "tpu.trace_stop"() : () -> ()
    %26 = vector.broadcast %2 : f32 to vector<4x8x8xf32>
    %27 = arith.mulf %25, %26 : vector<4x8x8xf32>
    %28 = tpu.transpose %27, [1, 0, 2] : vector<4x8x8xf32> -> vector<8x4x8xf32>
    %29 = vector.shape_cast %28 : vector<8x4x8xf32> to vector<8x32xf32>
    %c0_11 = arith.constant 0 : index
    %c0_12 = arith.constant 0 : index
    %c0_13 = arith.constant 0 : index
    %30 = vector.load %arg5[%c0_11, %c0_12, %c0_13] : memref<1x8x32xf32, #tpu.memory_space<vmem>>, vector<1x8x32xf32>
    %31 = vector.shape_cast %30 : vector<1x8x32xf32> to vector<8x32xf32>
    %32 = vector.shape_cast %29 : vector<8x32xf32> to vector<1x8x32xf32>
    tpu.vector_store %arg5[%c0_11, %c0_12, %c0_13], %32 {strides = array<i32>} : memref<1x8x32xf32, #tpu.memory_space<vmem>>, vector<1x8x32xf32>,
    %33 = math.absf %29 : vector<8x32xf32>
    %34 = vector.shape_cast %33 : vector<8x32xf32> to vector<1x8x32xf32>
    %cst_14 = arith.constant dense<0xFF800000> : vector<1xf32>
    %35 = vector.multi_reduction <maximumf>, %34, %cst_14 [1, 2] : vector<1x8x32xf32> to vector<1xf32>
    %36 = vector.shape_cast %35 : vector<1xf32> to vector<1x1x1xf32>
    %37 = vector.extract %36[0, 0, 0] : f32 from vector<1x1x1xf32>
    %38 = vector.broadcast %37 : f32 to vector<1x1x1x128xf32>
    %c0_15 = arith.constant 0 : index
    %c0_16 = arith.constant 0 : index
    %c0_17 = arith.constant 0 : index
    %c0_18 = arith.constant 0 : index
    %39 = vector.load %arg6[%c0_15, %c0_16, %c0_17, %c0_18] : memref<1x1x1x128xf32, #tpu.memory_space<vmem>>, vector<1x1x1x128xf32>
    tpu.vector_store %arg6[%c0_15, %c0_16, %c0_17, %c0_18], %38 {strides = array<i32>} : memref<1x1x1x128xf32, #tpu.memory_space<vmem>>, vector<1x1x1x128xf32>,
    return
  }
  func.func @transform_0(%arg0: i32, %arg1: i32) -> i32 {
    %c0_i32 = arith.constant 0 : i32
    %c0_i32_0 = arith.constant 0 : i32
    return %c0_i32 : i32
  }
  func.func @transform_1(%arg0: i32, %arg1: i32) -> (i32, i32, i32, i32) {
    %c0_i32 = arith.constant 0 : i32
    %c0_i32_0 = arith.constant 0 : i32
    %c0_i32_1 = arith.constant 0 : i32
    return %arg0, %c0_i32, %arg1, %c0_i32_0 : i32, i32, i32, i32
  }
  func.func @transform_2(%arg0: i32, %arg1: i32) -> (i32, i32, i32) {
    %c0_i32 = arith.constant 0 : i32
    %c0_i32_0 = arith.constant 0 : i32
    %c0_i32_1 = arith.constant 0 : i32
    return %arg0, %c0_i32, %c0_i32_0 : i32, i32, i32
  }
  func.func @transform_3(%arg0: i32, %arg1: i32) -> (i32, i32, i32) {
    %c0_i32 = arith.constant 0 : i32
    %c0_i32_0 = arith.constant 0 : i32
    return %arg0, %arg1, %c0_i32 : i32, i32, i32
  }
  func.func @transform_4(%arg0: i32, %arg1: i32) -> (i32, i32, i32, i32) {
    %c0_i32 = arith.constant 0 : i32
    %c0_i32_0 = arith.constant 0 : i32
    %c0_i32_1 = arith.constant 0 : i32
    return %arg0, %arg1, %c0_i32, %c0_i32_0 : i32, i32, i32, i32
  }
}

module attributes {stable_mosaic.version = 11 : i64} {
  func.func @_output_kernel(%arg0: i32, %arg1: i32, %arg2: memref<2xf32, #tpu.memory_space<smem>>, %arg3: memref<1x8x32xf32, #tpu.memory_space<vmem>>, %arg4: memref<1x8x32xf32, #tpu.memory_space<vmem>>, %arg5: memref<32x32xbf16, #tpu.memory_space<vmem>>, %arg6: memref<1x32xf32, #tpu.memory_space<vmem>>, %arg7: memref<1x32xf32, #tpu.memory_space<vmem>>, %arg8: memref<1x32xf32, #tpu.memory_space<vmem>>, %arg9: memref<1x8x32xf32, #tpu.memory_space<vmem>>, %arg10: memref<1x8x32xf32, #tpu.memory_space<vmem>>) attributes {dimension_semantics = [#tpu.dimension_semantics<parallel>, #tpu.dimension_semantics<parallel>], iteration_bounds = array<i64: 2, 1>, scalar_prefetch = 0 : i64, scratch_operands = 0 : i64, tpu.core_type = #tpu.core_type<tc>, window_params = [{transform_indices = @transform_0, window_bounds = array<i64: 2>}, {transform_indices = @transform_1, window_bounds = array<i64: 1, 8, 32>}, {transform_indices = @transform_2, window_bounds = array<i64: 1, 8, 32>}, {pipeline_mode = #tpu.pipeline_mode<synchronous>, transform_indices = @transform_3, window_bounds = array<i64: 32, 32>}, {pipeline_mode = #tpu.pipeline_mode<synchronous>, transform_indices = @transform_4, window_bounds = array<i64: 1, 32>}, {pipeline_mode = #tpu.pipeline_mode<synchronous>, transform_indices = @transform_5, window_bounds = array<i64: 1, 32>}, {pipeline_mode = #tpu.pipeline_mode<synchronous>, transform_indices = @transform_6, window_bounds = array<i64: 1, 32>}, {transform_indices = @transform_7, window_bounds = array<i64: 1, 8, 32>}, {transform_indices = @transform_8, window_bounds = array<i64: 1, 8, 32>}]} {
    %c0 = arith.constant 0 : index
    %0 = memref.load %arg2[%c0] : memref<2xf32, #tpu.memory_space<smem>>
    %c1 = arith.constant 1 : index
    %1 = memref.load %arg2[%c1] : memref<2xf32, #tpu.memory_space<smem>>
    %c0_0 = arith.constant 0 : index
    %c0_1 = arith.constant 0 : index
    %c0_2 = arith.constant 0 : index
    %2 = vector.load %arg3[%c0_0, %c0_1, %c0_2] : memref<1x8x32xf32, #tpu.memory_space<vmem>>, vector<1x8x32xf32>
    %3 = vector.shape_cast %2 : vector<1x8x32xf32> to vector<8x32xf32>
    %cst = arith.constant -2.500000e+00 : f32
    %cst_3 = arith.constant 2.500000e+00 : f32
    %4 = vector.broadcast %cst : f32 to vector<8x32xf32>
    %5 = arith.maximumf %4, %3 : vector<8x32xf32>
    %6 = vector.broadcast %cst_3 : f32 to vector<8x32xf32>
    %7 = arith.minimumf %6, %5 : vector<8x32xf32>
    %8 = vector.broadcast %0 : f32 to vector<8x32xf32>
    %9 = arith.mulf %7, %8 : vector<8x32xf32>
    %10 = math.roundeven %9 : vector<8x32xf32>
    %11 = arith.truncf %10 : vector<8x32xf32> to vector<8x32xbf16>
    %c0_4 = arith.constant 0 : index
    %c0_5 = arith.constant 0 : index
    %12 = vector.load %arg5[%c0_4, %c0_5] : memref<32x32xbf16, #tpu.memory_space<vmem>>, vector<32x32xbf16>
    %cst_6 = arith.constant dense<0.000000e+00> : vector<8x32xf32>
    %13 = tpu.matmul %11, %12, %cst_6 {dimension_numbers = #tpu.dot_dimension_numbers<[1], [0], [0], [1], [0, 0, 1, 1], [], []>} : vector<8x32xbf16>, vector<32x32xbf16>, vector<8x32xf32> -> vector<8x32xf32>
    %14 = vector.broadcast %1 : f32 to vector<8x32xf32>
    %15 = arith.mulf %13, %14 : vector<8x32xf32>
    %c0_7 = arith.constant 0 : index
    %c0_8 = arith.constant 0 : index
    %16 = vector.load %arg6[%c0_7, %c0_8] : memref<1x32xf32, #tpu.memory_space<vmem>>, vector<1x32xf32>
    %17 = vector.broadcast %16 : vector<1x32xf32> to vector<8x32xf32>
    %18 = arith.addf %15, %17 : vector<8x32xf32>
    %c0_9 = arith.constant 0 : index
    %c0_10 = arith.constant 0 : index
    %c0_11 = arith.constant 0 : index
    %19 = vector.load %arg10[%c0_9, %c0_10, %c0_11] : memref<1x8x32xf32, #tpu.memory_space<vmem>>, vector<1x8x32xf32>
    %20 = vector.shape_cast %19 : vector<1x8x32xf32> to vector<8x32xf32>
    %21 = vector.shape_cast %18 : vector<8x32xf32> to vector<1x8x32xf32>
    tpu.vector_store %arg10[%c0_9, %c0_10, %c0_11], %21 {strides = array<i32>} : memref<1x8x32xf32, #tpu.memory_space<vmem>>, vector<1x8x32xf32>,
    %c0_12 = arith.constant 0 : index
    %c0_13 = arith.constant 0 : index
    %c0_14 = arith.constant 0 : index
    %22 = vector.load %arg4[%c0_12, %c0_13, %c0_14] : memref<1x8x32xf32, #tpu.memory_space<vmem>>, vector<1x8x32xf32>
    %23 = vector.shape_cast %22 : vector<1x8x32xf32> to vector<8x32xf32>
    %24 = arith.addf %18, %23 : vector<8x32xf32>
    %cst_15 = arith.constant dense<0.000000e+00> : vector<8xf32>
    %25 = vector.multi_reduction <add>, %24, %cst_15 [1] : vector<8x32xf32> to vector<8xf32>
    %26 = vector.shape_cast %25 : vector<8xf32> to vector<8x1xf32>
    %cst_16 = arith.constant 3.200000e+01 : f32
    %27 = vector.broadcast %cst_16 : f32 to vector<8x1xf32>
    %28 = arith.divf %26, %27 : vector<8x1xf32>
    %29 = vector.broadcast %28 : vector<8x1xf32> to vector<8x32xf32>
    %30 = arith.subf %24, %29 : vector<8x32xf32>
    %31 = arith.mulf %30, %30 : vector<8x32xf32>
    %cst_17 = arith.constant dense<0.000000e+00> : vector<8xf32>
    %32 = vector.multi_reduction <add>, %31, %cst_17 [1] : vector<8x32xf32> to vector<8xf32>
    %33 = vector.shape_cast %32 : vector<8xf32> to vector<8x1xf32>
    %cst_18 = arith.constant 3.200000e+01 : f32
    %34 = vector.broadcast %cst_18 : f32 to vector<8x1xf32>
    %35 = arith.divf %33, %34 : vector<8x1xf32>
    %36 = vector.broadcast %28 : vector<8x1xf32> to vector<8x32xf32>
    %37 = arith.subf %24, %36 : vector<8x32xf32>
    %cst_19 = arith.constant 9.99999996E-13 : f32
    %38 = vector.broadcast %cst_19 : f32 to vector<8x1xf32>
    %39 = arith.addf %35, %38 : vector<8x1xf32>
    %40 = math.rsqrt %39 : vector<8x1xf32>
    %41 = vector.broadcast %40 : vector<8x1xf32> to vector<8x32xf32>
    %42 = arith.mulf %37, %41 : vector<8x32xf32>
    %c0_20 = arith.constant 0 : index
    %c0_21 = arith.constant 0 : index
    %43 = vector.load %arg7[%c0_20, %c0_21] : memref<1x32xf32, #tpu.memory_space<vmem>>, vector<1x32xf32>
    %44 = vector.broadcast %43 : vector<1x32xf32> to vector<8x32xf32>
    %45 = arith.mulf %44, %42 : vector<8x32xf32>
    %c0_22 = arith.constant 0 : index
    %c0_23 = arith.constant 0 : index
    %46 = vector.load %arg8[%c0_22, %c0_23] : memref<1x32xf32, #tpu.memory_space<vmem>>, vector<1x32xf32>
    %47 = vector.broadcast %46 : vector<1x32xf32> to vector<8x32xf32>
    %48 = arith.addf %45, %47 : vector<8x32xf32>
    %c0_24 = arith.constant 0 : index
    %c0_25 = arith.constant 0 : index
    %c0_26 = arith.constant 0 : index
    %49 = vector.load %arg9[%c0_24, %c0_25, %c0_26] : memref<1x8x32xf32, #tpu.memory_space<vmem>>, vector<1x8x32xf32>
    %50 = vector.shape_cast %49 : vector<1x8x32xf32> to vector<8x32xf32>
    %51 = vector.shape_cast %48 : vector<8x32xf32> to vector<1x8x32xf32>
    tpu.vector_store %arg9[%c0_24, %c0_25, %c0_26], %51 {strides = array<i32>} : memref<1x8x32xf32, #tpu.memory_space<vmem>>, vector<1x8x32xf32>,
    return
  }
  func.func @transform_0(%arg0: i32, %arg1: i32) -> i32 {
    %c0_i32 = arith.constant 0 : i32
    %c0_i32_0 = arith.constant 0 : i32
    return %c0_i32 : i32
  }
  func.func @transform_1(%arg0: i32, %arg1: i32) -> (i32, i32, i32) {
    %c0_i32 = arith.constant 0 : i32
    %c0_i32_0 = arith.constant 0 : i32
    return %arg0, %arg1, %c0_i32 : i32, i32, i32
  }
  func.func @transform_2(%arg0: i32, %arg1: i32) -> (i32, i32, i32) {
    %c0_i32 = arith.constant 0 : i32
    %c0_i32_0 = arith.constant 0 : i32
    return %arg0, %arg1, %c0_i32 : i32, i32, i32
  }
  func.func @transform_3(%arg0: i32, %arg1: i32) -> (i32, i32) {
    %c0_i32 = arith.constant 0 : i32
    %c0_i32_0 = arith.constant 0 : i32
    %c0_i32_1 = arith.constant 0 : i32
    return %c0_i32, %c0_i32_0 : i32, i32
  }
  func.func @transform_4(%arg0: i32, %arg1: i32) -> (i32, i32) {
    %c0_i32 = arith.constant 0 : i32
    %c0_i32_0 = arith.constant 0 : i32
    %c0_i32_1 = arith.constant 0 : i32
    return %c0_i32, %c0_i32_0 : i32, i32
  }
  func.func @transform_5(%arg0: i32, %arg1: i32) -> (i32, i32) {
    %c0_i32 = arith.constant 0 : i32
    %c0_i32_0 = arith.constant 0 : i32
    %c0_i32_1 = arith.constant 0 : i32
    return %c0_i32, %c0_i32_0 : i32, i32
  }
  func.func @transform_6(%arg0: i32, %arg1: i32) -> (i32, i32) {
    %c0_i32 = arith.constant 0 : i32
    %c0_i32_0 = arith.constant 0 : i32
    %c0_i32_1 = arith.constant 0 : i32
    return %c0_i32, %c0_i32_0 : i32, i32
  }
  func.func @transform_7(%arg0: i32, %arg1: i32) -> (i32, i32, i32) {
    %c0_i32 = arith.constant 0 : i32
    %c0_i32_0 = arith.constant 0 : i32
    return %arg0, %arg1, %c0_i32 : i32, i32, i32
  }
  func.func @transform_8(%arg0: i32, %arg1: i32) -> (i32, i32, i32) {
    %c0_i32 = arith.constant 0 : i32
    %c0_i32_0 = arith.constant 0 : i32
    return %arg0, %arg1, %c0_i32 : i32, i32, i32
  }
}

</mosaic_0001>

<bundles_post_ra>
// kernel: bert_attention.5
= control target key start
LH: loop header
LB: loop body
LE: loop exit
PB: predicated region body
PF: predicated region fallthrough
CT: control target
= control target key end

     0   :  { %12 = vsyncpa [#allocation4], 0  ;;  %s1673_s0 = inlined_call_operand.vmem [shape: f32[3], index: 0, kind: input, shape index: {}]   ;;  %s1674_s1 = inlined_call_operand.vmem [shape: f32[2,8,32], index: 1, kind: input, shape index: {}]   ;;  %s1675_s2 = inlined_call_operand.vmem [shape: f32[2,8,32], index: 2, kind: input, shape index: {}]   ;;  %s1676_s3 = inlined_call_operand.vmem [shape: f32[2,1,1,8], index: 3, kind: input, shape index: {}]   ;;  %s1677_s4 = inlined_call_operand.hbm [shape: f32[2,4,8,8], index: 4, kind: output, shape index: {0}]   ;;  %s1678_s5 = inlined_call_operand.vmem [shape: f32[2,4,8,8], index: 5, kind: output, shape index: {1}]   ;;  %s1679_s6 = inlined_call_operand.vmem [shape: f32[2,1,1,128], index: 6, kind: output, shape index: {2}]  }
   0x1   :  { %13 = vsyncpa [#allocation3], 0 }
   0x2   :  { %15 = vsyncpa [#allocation3 + $0x1], 0  ;;  %s1450_s21 = smov 0   ;;  %s1452_s22 = smov 0  }
   0x3   :  { %s1454_s23 = smov 0   ;;  %s1456_s24 = smov 0  }
   0x4   :  { %s1458_s25 = smov 0   ;;  %s1460_s26 = smov 0  }
   0x5 LB: > { %s1146_s27 = sadd.s32 4294967295, %s1402_s26   ;;  %s1147_s28 = sadd.s32 4294967294, %s1402_s26   ;;  %s1402_s26 = sphi %s1460_s26, %s21_s26   ;;  %s1398_s25 = sphi %s1458_s25, %s1688_s25   ;;  %s1394_s24 = sphi %s1456_s24, %s1687_s24   ;;  %s1390_s23 = sphi %s1454_s23, %s1686_s23   ;;  %s1386_s22 = sphi %s1452_s22, %s1685_s22   ;;  %s1382_s21 = sphi %s1450_s21, %s1684_s21  }
   0x6   : > { %s33_s29 = sadd.s32 1, %s1398_s25  ;;  %s143_s30 = sadd.s32 1, %s1390_s23 }
   0x7   : > { %p35_p0 = scmp.ge.s32.totalorder %s33_s29, 2  ;;  %p153_p1 = scmp.ne.s32.totalorder %s1390_s23, %s1386_s22 }
   0x8   : > { %p154_p2 = scmp.eq.s32.totalorder %s1146_s27, 1  ;;  %p159_p3 = scmp.ne.s32.totalorder %s1386_s22, %s1382_s21 }
   0x9   : > { %s1690_s29 = smov (%p35_p0, %s33_s29), 0  ;;  %p160_p5 = scmp.eq.s32.totalorder %s1147_s28, 1 }
   0xa   : > { %p1490_p4 = por %p154_p2, %p153_p1  ;;  %s138_s8 = ssub.s32 %s1398_s25, %s1690_s29 }
   0xb   : > { %p1148_p6 = scmp.ge.s32.totalorder %s1402_s26, 1  ;;  %p141_p7 = scmp.eq.s32.totalorder %s138_s8, 0 }
   0xc   : > { %p1497_p8 = por %p160_p5, %p159_p3  ;;  %p223_p9 = scmp.lt.s32.totalorder %s1402_s26, 3 }
   0xd   : > { %s1503_s10 = scalar_select %p141_p7, %s1390_s23, %s143_s30  }
   0xe   : > { %p1505_p10 = pnand %p1148_p6, %p223_p9  ;;  %p1509_p11 = scmp.eq.s32.totalorder %s1146_s27, 0 }
   0xf   : > { %s236_s15 = sshll.u32 %s1673_s0, 4  ;;  %s237_s15 = int_to_ptr.vmem [resolvable:$true] %s236_s15 }
  0x10   : > { %p1220_p12 = pneg %p1505_p10  ;;  %s1305_s16 = scalar_lea.vmem %s237_s15, 16 }
  0x11   : > { %p1306_p0 = scmp.ne.s32.totalorder %s237_s15, %s1305_s16  ;;  %p1313_p5 = scmp.lt.s32.totalorder %s237_s15, %s237_s15 }
  0x12   : > { %p1221_p13 = pnand %p1509_p11, %p1220_p12  ;;  %p1314_p6 = scmp.lt.s32.totalorder %s1305_s16, %s1305_s16 }
  0x14   : > { %p1307_p1 = pneg %p1221_p13  ;;  %p1315_p7 = por %p1314_p6, %p1313_p5 }
  0x16   : > { %p1308_p2 = pnand %p1307_p1, %p1306_p0 }
  0x18   : > { %p1309_p3 = pneg %p1308_p2 }
  0x1a   : > { %p1316_p9 = pnand %p1315_p7, %p1309_p3 }
  0x1c   : > { %1319 = shalt.err (!%p1316_p9)
}
  0x1d   : > { %s1404_s17 = smov [#allocation2]   ;;  %272 = sbr.rel (%p1505_p10) target bundleno = 952 (0x3b8), region = 36 }
  0x1e   : > { %1223 = dma.vmem_to_smem (!%p1221_p13), %s237_s15, 16, %s1404_s17, [#allocation4]  }
  0x24   : > { %1373 = dma.done.wait (%p1509_p11), [#allocation4], 16  }
  0x25   : > { %1375 = vsyncadd (%p1509_p11), [#allocation4], 4294967280 }
  0x26   : > { %278 = sfence }
  0x27   : > { %p326_p12 = scmp.lt.s32.totalorder %s1394_s24, 1  ;;  %s1158_s18 = sld [smem:[#allocation2 + $0x1]]  ;;  %v1408_v10 = vmov 0.0   ;;  %vm1409_vm0 = vmmov 0   ;;  %v1410_v11 = vmov 1983009808   ;;  %v385_v13 = vlaneseq }
  0x28   : > { %s355_s20 = sld [smem:[#allocation2]]  ;;  %s1405_s12 = smov 104   ;;  %1186 = vmatprep.subr.bf16.mxu0 %v1408_v10  ;;  %1192 = vmatprep.subr.bf16.mxu1 %v1408_v10  ;;  %v383_v12 = vunpack.c.l.s4 %v1410_v11  ;;  %v1411_v14 = vmov 1934713408   ;;  %vm670_vm1 = vcmask 64512  }
  0x29   : > { %s1528_s19 = scalar_select %p326_p12, %s1394_s24, 1  ;;  %1188 = vmatprep.mubr.msk.bf16.mxu0 %vm1409_vm0, %v1408_v10  ;;  %1194 = vmatprep.mubr.msk.bf16.mxu1 %vm1409_vm0, %v1408_v10  ;;  %v415_v15 = vunpack.c.l.s4 %v1411_v14  ;;  %v386_v17 = vshrl.u32 %v385_v13, 7 }
  0x2a   : > { %s1406_s15 = smov 120   ;;  %s1407_s16 = smov 112   ;;  %v384_v16 = vunpack.c.0.s8 %v383_v12 }
  0x2b   : > { %s1154_s27 = sshll.u32 %s1528_s19, 3  ;;  %v416_v20 = vunpack.c.0.s8 %v415_v15  ;;  %s1159_s17 = sld [smem:[#allocation2 + $0x2]] }
  0x2c   : > { %s336_s8 = scalar_lea.vmem %s1675_s2, %s1154_s27  ;;  %s332_s14 = scalar_lea.vmem %s1674_s1, %s1154_s27  ;;  %v387_v21 = vsub.s32 %v384_v16, %v386_v17 }
  0x2d   : > { %v364_v0 = vld [vmem:[%s336_s8] sm:$0xff]  ;;  %v367_v1 = vstv %s1158_s18  ;;  %v1543_v28 = vsub.s32 %v416_v20, %v386_v17  ;;  %s305_s18 = sand.u32 1, %s1386_s22   ;;  %s339_s28 = scalar_lea.vmem %s1676_s3, %s1528_s19 }
  0x2e   : > { %v358_v2 = vld [vmem:[%s332_s14] sm:$0xff]  ;;  %v1161_v3 = vclamps-f32 %v364_v0, 2.5  ;;  %v361_v6 = vstv %s355_s20  ;;  %s1153_s30 = sshll.u32 %s305_s18, 5  ;;  %s1176_s11 = sshll.u32 %s1528_s19, 5 }
  0x2f   : > { %v1160_v4 = vclamps-f32 %v358_v2, 2.5  ;;  %s1582_s8 = scalar_lea.vmem [#allocation5], %s1153_s30 }
  0x30   : > { %v368_v5 = vmul.f32 %v1161_v3, %v367_v1 }
  0x31   : > { %v362_v7 = vmul.f32 %v1160_v4, %v361_v6 }
  0x32   : > { %v1211_v8 = vround.rtne.f32 %v368_v5 }
  0x33   : > { %v1210_v9 = vround.rtne.f32 %v362_v7 }
  0x34   : > { %527 = vrot.lane.b32.xlu1 %v1211_v8, %s1405_s12  ;;  %521 = vrot.lane.b32.xlu0 %v1211_v8, %s1406_s15 }
  0x38   : > { %524 = vrot.lane.b32.xlu0 %v1211_v8, %s1407_s16  ;;  %371 = vrot.lane.b32.xlu1 %v1210_v9, %s1406_s15  ;;  %s970_s15 = sshll.u32 %s1582_s8, 4  ;;  %s1614_s15 = int_to_ptr.vmem [resolvable:$true] %s970_s15 }
  0x39   : > { %s1320_s30 = scalar_lea.vmem %s1614_s15, 512 }
  0x3a   : > { %p1321_p10 = scmp.ne.s32.totalorder %s1614_s15, %s1320_s30 }
  0x3c   : > { %374 = vrot.lane.b32.xlu0 %v1210_v9, %s1407_s16  ;;  %377 = vrot.lane.b32.xlu1 %v1210_v9, %s1405_s12  ;;  %s347_s12 = scalar_lea.vmem %s1678_s5, %s1176_s11  ;;  %s1177_s16 = sshll.u32 %s1394_s24, 9 }
  0x3d   : > { %s1619_s27 = scalar_lea.hbm %s1677_s4, %s1177_s16  ;;  %p1322_p11 = pnand %p1321_p10, %p1490_p4 }
  0x3f   : > { %p1323_p13 = pneg %p1322_p11 }
  0xa6   : > { %v528_v18 = vpop.permute.xlu1 %527  ;;  %v522_v19 = vpop.permute.xlu0 %521 }
  0xa7   : > { %v546_v22 = vcombine.low %v522_v19, %v528_v18  ;;  %v547_v23 = vcombine.high %v522_v19, %v528_v18 }
  0xa9   : > { %v554_v29 = vrot.slane %v546_v22, %v387_v21  ;;  %v561_v30 = vrot.slane %v547_v23, %v387_v21 }
  0xaa   : > { %v525_v24 = vpop.permute.xlu0 %524  ;;  %v372_v25 = vpop.permute.xlu1 %371 }
  0xab   : > { %v530_v26 = vcombine.low %v1211_v8, %v525_v24  ;;  %v531_v27 = vcombine.high %v1211_v8, %v525_v24 }
  0xad   : > { %v538_v31 = vrot.slane %v530_v26, %v387_v21  ;;  %v545_v32 = vrot.slane %v531_v27, %v387_v21 }
  0xae   : > { %v375_v33 = vpop.permute.xlu0 %374  ;;  %v378_v34 = vpop.permute.xlu1 %377 }
  0xaf   : > { %v562_v35 = vcombine.low %v538_v31, %v554_v29  ;;  %v563_v36 = vcombine.high %v538_v31, %v554_v29  ;;  %v578_v37 = vcombine.low %v545_v32, %v561_v30  ;;  %v579_v38 = vcombine.high %v545_v32, %v561_v30 }
  0xb0   : > { %v380_v39 = vcombine.low %v1210_v9, %v375_v33  ;;  %v381_v40 = vcombine.high %v1210_v9, %v375_v33  ;;  %v396_v41 = vcombine.low %v372_v25, %v378_v34  ;;  %v397_v42 = vcombine.high %v372_v25, %v378_v34 }
  0xb1   : > { %v570_v43 = vrot.slane %v562_v35, %v1543_v28  ;;  %v577_v44 = vrot.slane %v563_v36, %v1543_v28  ;;  %v586_v45 = vrot.slane %v578_v37, %v1543_v28  ;;  %v593_v46 = vrot.slane %v579_v38, %v1543_v28 }
  0xb2   : > { %v388_v47 = vrot.slane %v380_v39, %v387_v21  ;;  %v395_v48 = vrot.slane %v381_v40, %v387_v21  ;;  %v404_v49 = vrot.slane %v396_v41, %v387_v21  ;;  %v411_v50 = vrot.slane %v397_v42, %v387_v21 }
  0xb3   : > { %v598_v51 = vcombine.low %v570_v43, %v577_v44  ;;  %v1164_v52 = vcombine.high %v570_v43, %v577_v44  ;;  %v614_v53 = vcombine.low %v586_v45, %v593_v46  ;;  %v1165_v54 = vcombine.high %v586_v45, %v593_v46 }
  0xb4   : > { %v412_v55 = vcombine.low %v388_v47, %v404_v49  ;;  %v413_v56 = vcombine.high %v388_v47, %v404_v49  ;;  %v428_v57 = vcombine.low %v395_v48, %v411_v50  ;;  %v429_v58 = vcombine.high %v395_v48, %v411_v50  ;;  %v1170_v50 = vld [vmem:[%s339_s28] ss:$0 sm:$0xff]  ;;  %s1623_s28 = scalar_lea.sflag [#allocation3], %s305_s18 }
  0xb5   : > { %v605_v59 = vrot.slane %v598_v51, %v387_v21  ;;  %v613_v60 = vrot.slane %v1164_v52, %v387_v21  ;;  %v621_v61 = vrot.slane %v614_v53, %v387_v21  ;;  %v629_v62 = vrot.slane %v1165_v54, %v387_v21 }
  0xb6   : > { %v420_v63 = vrot.slane %v412_v55, %v1543_v28  ;;  %v427_v0 = vrot.slane %v413_v56, %v1543_v28  ;;  %v436_v1 = vrot.slane %v428_v57, %v1543_v28  ;;  %v443_v2 = vrot.slane %v429_v58, %v1543_v28 }
  0xb7   : > { %v630_v3 = vcombine.low %v605_v59, %v613_v60  ;;  %v646_v4 = vcombine.low %v621_v61, %v629_v62  ;;  %v631_v5 = vcombine.high %v605_v59, %v613_v60  ;;  %v647_v6 = vcombine.high %v621_v61, %v629_v62 }
  0xb8   : > { %v448_v7 = vcombine.low %v420_v63, %v427_v0  ;;  %v1162_v8 = vcombine.high %v420_v63, %v427_v0  ;;  %v464_v9 = vcombine.low %v436_v1, %v443_v2  ;;  %v1163_v11 = vcombine.high %v436_v1, %v443_v2 }
  0xb9   : > { %v638_v12 = vrot.slane %v630_v3, %v1543_v28  ;;  %v654_v13 = vrot.slane %v646_v4, %v1543_v28  ;;  %v645_v20 = vrot.slane %v631_v5, %v1543_v28  ;;  %v661_v22 = vrot.slane %v647_v6, %v1543_v28 }
  0xba   : > { %v455_v14 = vrot.slane %v448_v7, %v387_v21  ;;  %v463_v15 = vrot.slane %v1162_v8, %v387_v21  ;;  %v471_v16 = vrot.slane %v464_v9, %v387_v21  ;;  %v479_v17 = vrot.slane %v1163_v11, %v387_v21 }
  0xbb   : > { %v662_v18 = vcombine.low %v638_v12, %v654_v13  ;;  %v663_v19 = vcombine.high %v638_v12, %v654_v13  ;;  %v664_v21 = vcombine.low %v645_v20, %v661_v22  ;;  %v665_v32 = vcombine.high %v645_v20, %v661_v22 }
  0xbc   : > { %v480_v23 = vcombine.low %v455_v14, %v463_v15  ;;  %v496_v24 = vcombine.low %v471_v16, %v479_v17  ;;  %v481_v33 = vcombine.high %v455_v14, %v463_v15  ;;  %v497_v34 = vcombine.high %v471_v16, %v479_v17 }
  0xbd   : > { %v666_v25 = vpack.c.bf16 %v662_v18, %v662_v18  ;;  %v667_v26 = vpack.c.bf16 %v663_v19, %v663_v19  ;;  %v668_v37 = vpack.c.bf16 %v664_v21, %v664_v21  ;;  %v669_v38 = vpack.c.bf16 %v665_v32, %v665_v32 }
  0xbe   : > { %v488_v27 = vrot.slane %v480_v23, %v1543_v28  ;;  %v504_v29 = vrot.slane %v496_v24, %v1543_v28  ;;  %v495_v41 = vrot.slane %v481_v33, %v1543_v28  ;;  %v511_v42 = vrot.slane %v497_v34, %v1543_v28 }
  0xbf   : > { %v675_v30 = vsel %vm670_vm1, %v666_v25, 0  ;;  %v721_v31 = vsel %vm670_vm1, %v667_v26, 0  ;;  %v767_v43 = vsel %vm670_vm1, %v668_v37, 0  ;;  %v813_v44 = vsel %vm670_vm1, %v669_v38, 0 }
  0xc0   : > { %1187 = vmatpush3.bf16.xpose.msra.mxu0 %v675_v30  ;;  %1193 = vmatpush3.bf16.xpose.msra.mxu1 %v721_v31  ;;  %v512_v35 = vcombine.low %v488_v27, %v504_v29  ;;  %v513_v36 = vcombine.high %v488_v27, %v504_v29  ;;  %v514_v28 = vcombine.low %v495_v41, %v511_v42  ;;  %v855_v48 = vstv %s1159_s17 }
  0xc1   : > { %1198 = vmatprep.subr.bf16.mxu0 %v1408_v10  ;;  %1204 = vmatprep.subr.bf16.mxu1 %v1408_v10  ;;  %v515_v45 = vcombine.high %v495_v41, %v511_v42 }
  0xc2   : > { %v516_v39 = vpack.c.bf16 %v512_v35, %v512_v35  ;;  %v517_v40 = vpack.c.bf16 %v513_v36, %v513_v36  ;;  %v518_v46 = vpack.c.bf16 %v514_v28, %v514_v28 }
  0xc3   : > { %v519_v47 = vpack.c.bf16 %v515_v45, %v515_v45 }
  0xc7   : > { %1189 = vmatmul.mubr.msk.bf16.vlgmr.msra.gmra.mrb[0].mxu0 %vm670_vm1, %v516_v39  ;;  %1195 = vmatmul.mubr.msk.bf16.vlgmr.msra.gmra.mrb[0].mxu1 %vm670_vm1, %v517_v40 }
  0xc8   : > { %1199 = vmatpush3.bf16.xpose.msra.mxu0 %v767_v43  ;;  %1205 = vmatpush3.bf16.xpose.msra.mxu1 %v813_v44 }
  0xc9   : > { %1200 = vmatprep.mubr.msk.bf16.mxu0 %vm1409_vm0, %v1408_v10  ;;  %1206 = vmatprep.mubr.msk.bf16.mxu1 %vm1409_vm0, %v1408_v10 }
  0xcf   : > { %1201 = vmatmul.mubr.msk.bf16.vlgmr.msra.gmra.mrb[4].mxu0 %vm670_vm1, %v518_v46  ;;  %1207 = vmatmul.mubr.msk.bf16.vlgmr.msra.gmra.mrb[4].mxu1 %vm670_vm1, %v519_v47 }
 0x19a   : > { %v711_v49 = vpop.f32.mrb[0].mxu0  ;;  %v757_v10 = vpop.f32.mrb[0].mxu1 }
 0x19b   : > { %v856_v51 = vmul.f32 %v855_v48, %v711_v49  ;;  %v857_v52 = vmul.f32 %v855_v48, %v757_v10  ;;  %v1190_v53 = vpop.f32.mrb[1].mxu0  ;;  %v1196_v54 = vpop.f32.mrb[1].mxu1 }
 0x19c   : > { %v714_v55 = vpop.f32.mrb[2].mxu0  ;;  %v760_v56 = vpop.f32.mrb[2].mxu1 }
 0x19d   : > { %v867_v57 = vadd.f32 %v1170_v50, %v856_v51  ;;  %v868_v58 = vadd.f32 %v1170_v50, %v857_v52  ;;  %v1191_v59 = vpop.f32.mrb[3].mxu0  ;;  %v1197_v60 = vpop.f32.mrb[3].mxu1 }
 0x19f   : > { %871 = vst.msk [vmem:[%s1582_s8] sm:$0xff] %vm670_vm1, %v867_v57  ;;  %872 = vst.msk [vmem:[%s1582_s8 + $0x8] sm:$0xff] %vm670_vm1, %v868_v58  ;;  %v878_v61 = vsel %vm670_vm1, %v868_v58, -inf  ;;  %v875_v62 = vsel %vm670_vm1, %v867_v57, -inf }
 0x1a0   : > { %879 = vmax.xlane.f32.xlu1 %v878_v61  ;;  %876 = vmax.xlane.f32.xlu0 %v875_v62 }
 0x1a2   : > { %v803_v63 = vpop.f32.mrb[4].mxu0  ;;  %v849_v0 = vpop.f32.mrb[4].mxu1 }
 0x1a3   : > { %v858_v1 = vmul.f32 %v855_v48, %v803_v63  ;;  %v859_v2 = vmul.f32 %v855_v48, %v849_v0  ;;  %v1202_v3 = vpop.f32.mrb[5].mxu0  ;;  %v1208_v4 = vpop.f32.mrb[5].mxu1 }
 0x1a4   : > { %v806_v5 = vpop.f32.mrb[6].mxu0  ;;  %v852_v6 = vpop.f32.mrb[6].mxu1 }
 0x1a5   : > { %v869_v7 = vadd.f32 %v1170_v50, %v858_v1  ;;  %v870_v8 = vadd.f32 %v1170_v50, %v859_v2  ;;  %v1203_v9 = vpop.f32.mrb[7].mxu0  ;;  %v1209_v11 = vpop.f32.mrb[7].mxu1 }
 0x1a7   : > { %873 = vst.msk [vmem:[%s1582_s8 + $0x10] sm:$0xff] %vm670_vm1, %v869_v7  ;;  %874 = vst.msk [vmem:[%s1582_s8 + $0x18] sm:$0xff] %vm670_vm1, %v870_v8  ;;  %v881_v12 = vsel %vm670_vm1, %v869_v7, -inf  ;;  %v884_v13 = vsel %vm670_vm1, %v870_v8, -inf  ;;  %s1412_s8 = smov [#allocation5]  }
 0x1a8   : > { %882 = vmax.xlane.f32.xlu0 %v881_v12  ;;  %s1324_s24 = sshll.u32 %s1412_s8, 4  ;;  %s1325_s24 = int_to_ptr.vmem [resolvable:$false] %s1324_s24 }
 0x1a9   : > { %s1326_s11 = scalar_lea.vmem %s1325_s24, 1024  ;;  %p1327_p0 = scmp.lt.s32.totalorder %s1614_s15, %s1325_s24 }
 0x1aa   : > { %p1328_p1 = scmp.lt.s32.totalorder %s1326_s11, %s1320_s30 }
 0x1ac   : > { %885 = vmax.xlane.f32.xlu0 %v884_v13  ;;  %p1329_p2 = por %p1328_p1, %p1327_p0 }
 0x1ae   : > { %p1330_p3 = pnand %p1329_p2, %p1323_p13 }
 0x22d   : > { %v880_v14 = vpop.xlane.xlu1 %879  ;;  %v877_v15 = vpop.xlane.xlu0 %876 }
 0x22e   : > { %v888_v16 = vsub.f32 %v868_v58, %v880_v14  ;;  %v887_v17 = vsub.f32 %v867_v57, %v877_v15 }
 0x230   : > { %v893_v18 = vmul.f32 1.442695, %v888_v16  ;;  %v891_v19 = vmul.f32 1.442695, %v887_v17 }
 0x232   : > { %1289 = vpow2.f32 %v893_v18 }
 0x233   : > { %1291 = vpow2.f32 %v891_v19 }
 0x235   : > { %v883_v20 = vpop.xlane.xlu0 %882 }
 0x236   : > { %v889_v22 = vsub.f32 %v869_v7, %v883_v20 }
 0x238   : > { %v895_v23 = vmul.f32 1.442695, %v889_v22 }
 0x239   : > { %v886_v24 = vpop.xlane.xlu0 %885 }
 0x23a   : > { %1293 = vpow2.f32 %v895_v23  ;;  %v890_v25 = vsub.f32 %v870_v8, %v886_v24 }
 0x23c   : > { %v1290_v26 = vpop.eup %1289  ;;  %v897_v27 = vmul.f32 1.442695, %v890_v25 }
 0x23d   : > { %v1292_v29 = vpop.eup %1291  ;;  %v902_v30 = vsel %vm670_vm1, %v1290_v26, 0.0 }
 0x23e   : > { %1295 = vpow2.f32 %v897_v27  ;;  %v899_v31 = vsel %vm670_vm1, %v1292_v29, 0.0  ;;  %903 = vadd.xlane.f32.xlu0 %v902_v30 }
 0x23f   : > { %900 = vadd.xlane.f32.xlu1 %v899_v31 }
 0x244   : > { %v1294_v21 = vpop.eup %1293 }
 0x245   : > { %v905_v32 = vsel %vm670_vm1, %v1294_v21, 0.0 }
 0x246   : > { %906 = vadd.xlane.f32.xlu1 %v905_v32 }
 0x248   : > { %v1296_v33 = vpop.eup %1295 }
 0x249   : > { %v908_v34 = vsel %vm670_vm1, %v1296_v33, 0.0 }
 0x24a   : > { %909 = vadd.xlane.f32.xlu0 %v908_v34 }
 0x2cb   : > { %v904_v35 = vpop.xlane.xlu0 %903 }
 0x2cc   : > { %v901_v36 = vpop.xlane.xlu1 %900  ;;  %1297 = vrcp.f32 %v904_v35 }
 0x2cd   : > { %1299 = vrcp.f32 %v901_v36 }
 0x2d3   : > { %v907_v37 = vpop.xlane.xlu1 %906 }
 0x2d4   : > { %1301 = vrcp.f32 %v907_v37 }
 0x2d6   : > { %v1298_v38 = vpop.eup %1297 }
 0x2d7   : > { %v1300_v39 = vpop.eup %1299  ;;  %v910_v40 = vpop.xlane.xlu0 %909  ;;  %v916_v41 = vmul.f32 %v1298_v38, %v1290_v26 }
 0x2d8   : > { %1303 = vrcp.f32 %v910_v40  ;;  %v915_v42 = vmul.f32 %v1300_v39, %v1292_v29 }
 0x2d9   : > { %920 = vst.msk [vmem:[%s347_s12 + $0x8] sm:$0xff] %vm670_vm1, %v916_v41  ;;  %v924_v47 = vsel %vm670_vm1, %v916_v41, -inf }
 0x2da   : > { %919 = vst.msk [vmem:[%s347_s12] sm:$0xff] %vm670_vm1, %v915_v42  ;;  %v923_v46 = vsel %vm670_vm1, %v915_v42, -inf }
 0x2db   : > { %v927_v50 = vmax.f32 %v923_v46, %v924_v47 }
 0x2de   : > { %v1302_v43 = vpop.eup %1301 }
 0x2df   : > { %v917_v44 = vmul.f32 %v1302_v43, %v1294_v21 }
 0x2e1   : > { %921 = vst.msk [vmem:[%s347_s12 + $0x10] sm:$0xff] %vm670_vm1, %v917_v44  ;;  %v925_v48 = vsel %vm670_vm1, %v917_v44, -inf }
 0x2e2   : > { %v1304_v28 = vpop.eup %1303 }
 0x2e3   : > { %v918_v45 = vmul.f32 %v1304_v28, %v1296_v33 }
 0x2e5   : > { %v926_v49 = vsel %vm670_vm1, %v918_v45, -inf  ;;  %922 = vst.msk [vmem:[%s347_s12 + $0x18] sm:$0xff] %vm670_vm1, %v918_v45 }
 0x2e6   : > { %v928_v10 = vmax.f32 %v925_v48, %v926_v49 }
 0x2e8   : > { %v929_v51 = vmax.f32 %v927_v50, %v928_v10 }
 0x2ea   : > { %930 = vmax.xlane.f32.xlu1 %v929_v51 }
 0x2eb   : > { %1333 = shalt.err (!%p1330_p3)
}
 0x2ec   : > { %s1334_s18 = scalar_lea.hbm %s1619_s27, 512  ;;  %s1338_s12 = scalar_lea.hbm %s1677_s4, 1024 }
 0x2ed   : > { %p1335_p5 = scmp.ne.s32.totalorder %s1619_s27, %s1334_s18  ;;  %p1339_p9 = scmp.lt.u32.totalorder %s1619_s27, %s1677_s4 }
 0x2ee   : > { %p1340_p12 = scmp.lt.u32.totalorder %s1338_s12, %s1334_s18  ;;  %p1342_p11 = scmp.lt.u32.totalorder %s1334_s18, %s1619_s27 }
 0x2ef   : > { %p1336_p6 = pnand %p1335_p5, %p1490_p4 }
 0x2f0   : > { %p1341_p10 = por %p1340_p12, %p1339_p9 }
 0x2f1   : > { %p1337_p7 = pneg %p1336_p6 }
 0x2f2   : > { %p1343_p13 = por %p1342_p11, %p1341_p10 }
 0x2f4   : > { %p1344_p0 = pnand %p1343_p13, %p1337_p7 }
 0x2f6   : > { %1347 = shalt.err (!%p1344_p0)
}
 0x2f7   : > { %s1413_s20 = smov 128   ;;  %s1414_s30 = smov 8  }
 0x2f8   : > { %1218 = dma.vmem_to_hbm [thread:$0]  (%p1490_p4), %s1614_s15, 512, %s1619_s27, %s1623_s28, %s1413_s20, %s1413_s20, %s1414_s30  }
 0x2f9   : > { %s353_s11 = scalar_lea.vmem %s1679_s6, %s1528_s19 }
 0x377   : > { %v931_v52 = vpop.xlane.xlu1 %930 }
 0x378   : > { %v932_v53 = vrot.slane %v931_v52, 4 }
 0x37a   : > { %v933_v54 = vmax.f32 %v931_v52, %v932_v53 }
 0x37c   : > { %v934_v55 = vrot.slane %v933_v54, 2 }
 0x37e   : > { %v935_v56 = vmax.f32 %v933_v54, %v934_v55 }
 0x380   : > { %v936_v57 = vrot.slane %v935_v56, 1 }
 0x382   : > { %v937_v58 = vmax.f32 %v935_v56, %v936_v57 }
 0x384   : > { %1212 = vpush %v937_v58 }
 0x3b5   : > { %s1213_s18 = spop %1212 }
 0x3b6   : > { %v939_v59 = vstv %s1213_s18 }
 0x3b7   : > { %940 = vst [vmem:[%s353_s11] sm:$0x1] %v939_v59 }
 0x3b8 PF: > { %p1230_p4 = scmp.ge.s32.totalorder %s1402_s26, 2  ;;  %s991_s7 = sand.u32 1, %s1382_s21  }
 0x3b9   : > { %s992_s15 = scalar_lea.sflag [#allocation3], %s991_s7 }
 0x3ba   : > { %p1225_p1 = pnand %p1230_p4, %p1497_p8 }
 0x3bc   : > { %1377 = dma.done.wait (!%p1225_p1), %s992_s15, 512  }
 0x3bd   : > { %1379 = vsyncadd (!%p1225_p1), %s992_s15, 4294966784  ;;  %s21_s26 = sadd.s32 1, %s1402_s26   ;;  %s1684_s21 = smov %s1386_s22 }
 0x3be   : > { %p18_p2 = scmp.ge.s32.totalorder %s21_s26, 4   ;;  %s1685_s22 = smov %s1390_s23 }
 0x3bf   : > { %s1686_s23 = smov %s1503_s10  ;;  %s1687_s24 = smov %s1398_s25 }
 0x3c0   : > { %s1688_s25 = smov %s1690_s29  ;;  %20 = sbr.rel (!%p18_p2) target bundleno = 5 (0x5), region = 106 }
 0x3c7   :  { %1017 = vsyncpa [#allocation3], 1 }
 0x3c8   :  { %1019 = vsyncpa [#allocation3 + $0x1], 1 }
 0x3c9   :  { %1020 = vsyncpa [#allocation4], 1 }
 0x3ca   :  { %1022 = vsyncpa [#allocation4 + $0x1], 1 }

// kernel: bert_attention.4
= control target key start
LH: loop header
LB: loop body
LE: loop exit
PB: predicated region body
PF: predicated region fallthrough
CT: control target
= control target key end

     0   :  { %16 = vsyncpa [#allocation3], 0  ;;  %s1452_s0 = inlined_call_operand.vmem [shape: f32[2,8,32], index: 0, kind: input, shape index: {}]   ;;  %s1453_s1 = inlined_call_operand.hbm [shape: bf16[32,32], index: 1, kind: input, shape index: {}]   ;;  %s1454_s2 = inlined_call_operand.vmem [shape: f32[1,32], index: 2, kind: input, shape index: {}]   ;;  %s1455_s3 = inlined_call_operand.hbm [shape: bf16[32,32], index: 3, kind: input, shape index: {}]   ;;  %s1456_s4 = inlined_call_operand.vmem [shape: f32[1,32], index: 4, kind: input, shape index: {}]   ;;  %s1457_s5 = inlined_call_operand.hbm [shape: bf16[32,32], index: 5, kind: input, shape index: {}]   ;;  %s1458_s6 = inlined_call_operand.vmem [shape: f32[1,32], index: 6, kind: input, shape index: {}]   ;;  %s1459_s7 = inlined_call_operand.vmem [shape: f32[2,8,32], index: 7, kind: output, shape index: {0}]   ;;  %s1460_s8 = inlined_call_operand.vmem [shape: f32[2,8,32], index: 8, kind: output, shape index: {1}]   ;;  %s1461_s9 = inlined_call_operand.vmem [shape: f32[2,8,32], index: 9, kind: output, shape index: {2}]   ;;  %s1462_s10 = inlined_call_operand.vmem [shape: f32[2,1,3,128], index: 10, kind: output, shape index: {3}]  }
   0x1   :  { %17 = vsyncpa [#allocation5], 0  ;;  %s1266_s13 = smov 0   ;;  %s1268_s14 = smov 0  }
   0x2   :  { %s1270_s15 = smov 0  }
   0x3 LB: > { %1468 = sst [smem:[#allocation9_spill]] %s1198_s14  ;;  %s954_s16 = sadd.s32 4294967295, %s1202_s15   ;;  %s1202_s15 = sphi %s1270_s15, %s23_s15   ;;  %s1198_s14 = sphi %s1268_s14, %s1479_s14   ;;  %s1194_s13 = sphi %s1266_s13, %s1478_s13  }
   0x4   : > { %1469 = sst [smem:[#allocation10_spill]] %s1202_s15  ;;  %p956_p0 = scmp.ge.s32.totalorder %s1202_s15, 1 }
   0x5   : > { %p306_p1 = scmp.lt.s32.totalorder %s1202_s15, 3  ;;  %p1284_p2 = scmp.eq.s32.totalorder %s954_s16, 0 }
   0x6   : > { %s1204_s19 = smov [#allocation4]   ;;  %s35_s22 = sadd.s32 1, %s1198_s14 }
   0x7   : > { %s1470_s17 = scalar_select %p1284_p2, 1, 0 }
   0x8   : > { %p1288_p3 = pnand %p956_p0, %p306_p1  ;;  %s334_s20 = sshll.u32 %s1204_s19, 4  ;;  %s1292_s20 = int_to_ptr.vmem [resolvable:$true] %s334_s20 }
   0x9   : > { %p1303_p6 = scmp.ge.s32.totalorder %s35_s22, 2  ;;  %s1205_s24 = smov [#allocation2]  }
   0xa   : > { %s1471_s18 = scalar_select %p1288_p3, 1, 0 }
   0xb   : > { %p1035_p4 = pneg %p1288_p3  ;;  %s318_s25 = sshll.u32 %s1205_s24, 4  ;;  %s319_s25 = int_to_ptr.vmem [resolvable:$true] %s318_s25 }
   0xc   : > { %s1088_s28 = scalar_lea.hbm %s1455_s3, 256 }
   0xd   : > { %p1298_p5 = pnand %p1284_p2, %p1035_p4  ;;  %p1089_p7 = scmp.ne.s32.totalorder %s1455_s3, %s1088_s28 }
   0xe   : > { %p1095_p11 = scmp.lt.u32.totalorder %s1088_s28, %s1455_s3 }
   0xf   : > { %p1315_p8 = pneg %p1298_p5 }
  0x11   : > { %p1091_p9 = pnand %p1315_p8, %p1089_p7 }
  0x13   : > { %p1092_p10 = pneg %p1091_p9 }
  0x15   : > { %p1097_p12 = pnand %p1095_p11, %p1092_p10 }
  0x17   : > { %1100 = shalt.err (!%p1097_p12)
}
  0x18   : > { %s1101_s19 = scalar_lea.vmem %s1292_s20, 256  ;;  %p1109_p4 = scmp.lt.s32.totalorder %s1292_s20, %s1292_s20 }
  0x19   : > { %p1102_p13 = scmp.ne.s32.totalorder %s1292_s20, %s1101_s19  ;;  %p1110_p2 = scmp.lt.s32.totalorder %s1101_s19, %s1101_s19 }
  0x1b   : > { %p1104_p0 = pnand %p1102_p13, %p1315_p8  ;;  %p1111_p7 = por %p1110_p2, %p1109_p4 }
  0x1d   : > { %p1105_p1 = pneg %p1104_p0 }
  0x1f   : > { %p1112_p9 = pnand %p1111_p7, %p1105_p1 }
  0x21   : > { %1115 = shalt.err (!%p1112_p9)
}
  0x22   : > { %s1206_s24 = smov 64   ;;  %s1207_s26 = smov 4  }
  0x23   : > { %1041 = dma.hbm_to_vmem [thread:$0]  (!%p1298_p5), %s1455_s3, 256, %s1292_s20, [#allocation5], %s1206_s24, %s1206_s24, %s1207_s26  }
  0x24   : > { %s1481_s22 = smov (%p1303_p6, %s35_s22), 0  ;;  %s1116_s12 = scalar_lea.hbm %s1453_s1, 256 }
  0x25   : > { %p1117_p2 = scmp.ne.s32.totalorder %s1453_s1, %s1116_s12  ;;  %p1123_p12 = scmp.lt.u32.totalorder %s1116_s12, %s1453_s1 }
  0x27   : > { %p1119_p10 = pnand %p1117_p2, %p1315_p8 }
  0x29   : > { %p1120_p11 = pneg %p1119_p10 }
  0x2b   : > { %p1125_p13 = pnand %p1123_p12, %p1120_p11 }
  0x2d   : > { %1128 = shalt.err (!%p1125_p13)
}
  0x2e   : > { %s1129_s20 = scalar_lea.vmem %s319_s25, 256  ;;  %p1137_p4 = scmp.lt.s32.totalorder %s319_s25, %s319_s25 }
  0x2f   : > { %p1130_p6 = scmp.ne.s32.totalorder %s319_s25, %s1129_s20  ;;  %p1138_p7 = scmp.lt.s32.totalorder %s1129_s20, %s1129_s20 }
  0x31   : > { %p1132_p0 = pnand %p1130_p6, %p1315_p8  ;;  %p1139_p9 = por %p1138_p7, %p1137_p4 }
  0x33   : > { %p1133_p1 = pneg %p1132_p0 }
  0x35   : > { %p1140_p3 = pnand %p1139_p9, %p1133_p1 }
  0x37   : > { %1143 = shalt.err (!%p1140_p3)
}
  0x38   : > { %1038 = dma.hbm_to_vmem [thread:$0]  (!%p1298_p5), %s1453_s1, 256, %s319_s25, [#allocation3], %s1206_s24, %s1206_s24, %s1207_s26  }
  0x39   : > { %s1208_s23 = smov [#allocation6]   ;;  %s1144_s30 = scalar_lea.hbm %s1457_s5, 256 }
  0x3a   : > { %s350_s27 = sshll.u32 %s1208_s23, 4  ;;  %p1145_p3 = scmp.ne.s32.totalorder %s1457_s5, %s1144_s30  ;;  %s351_s27 = int_to_ptr.vmem [resolvable:$true] %s350_s27 }
  0x3b   : > { %p1151_p11 = scmp.lt.u32.totalorder %s1144_s30, %s1457_s5 }
  0x3c   : > { %p1147_p2 = pnand %p1145_p3, %p1315_p8 }
  0x3e   : > { %p1148_p10 = pneg %p1147_p2 }
  0x40   : > { %p1153_p12 = pnand %p1151_p11, %p1148_p10 }
  0x42   : > { %1156 = shalt.err (!%p1153_p12)
}
  0x43   : > { %s1157_s25 = scalar_lea.vmem %s351_s27, 256  ;;  %p1165_p1 = scmp.lt.s32.totalorder %s351_s27, %s351_s27 }
  0x44   : > { %p1158_p13 = scmp.ne.s32.totalorder %s351_s27, %s1157_s25  ;;  %p1166_p4 = scmp.lt.s32.totalorder %s1157_s25, %s1157_s25 }
  0x46   : > { %p1160_p6 = pnand %p1158_p13, %p1315_p8  ;;  %p1167_p7 = por %p1166_p4, %p1165_p1 }
  0x48   : > { %p1161_p0 = pneg %p1160_p6 }
  0x4a   : > { %p1168_p9 = pnand %p1167_p7, %p1161_p0 }
  0x4c   : > { %1171 = shalt.err (!%p1168_p9)
}
  0x4d   : > { %1044 = dma.hbm_to_vmem [thread:$0]  (!%p1298_p5), %s1457_s5, 256, %s351_s27, [#allocation5], %s1206_s24, %s1206_s24, %s1207_s26  }
  0x4e   : > { %p1475_p3 = scmp.ne.s32.totalorder %s1471_s18, 0 }
  0x4f   : > { %p1476_p8 = scmp.ne.s32.totalorder (!%p1475_p3), %s1470_s17, 0 }
  0x50   : > { %379 = sbr.rel (%p1475_p3) target bundleno = 532 (0x214), region = 48 }
  0x57   : > { %1185 = dma.done.wait (%p1476_p8), [#allocation3], 256  }
  0x58   : > { %1187 = vsyncadd (%p1476_p8), [#allocation3], 4294967040 }
  0x59   : > { %1189 = dma.done.wait (%p1476_p8), [#allocation5], 512  }
  0x5a   : > { %1191 = vsyncadd (%p1476_p8), [#allocation5], 4294966784  ;;  %p450_p2 = scmp.lt.s32.totalorder %s1194_s13, 1  ;;  %v1209_v0 = vmov 0.0   ;;  %vm1210_vm0 = vmmov 0   ;;  %v1082_v1 = vld [vmem:[#allocation2] sm:$0xff]  }
  0x5b   : > { %993 = vmatprep.subr.bf16.mxu0 %v1209_v0  ;;  %1001 = vmatprep.subr.bf16.mxu1 %v1209_v0  ;;  %v1083_v2 = vld [vmem:[#allocation2 + $0x8] sm:$0xff]   ;;  %v1084_v3 = vld [vmem:[#allocation4] sm:$0xff]   ;;  %v1085_v5 = vld [vmem:[#allocation4 + $0x8] sm:$0xff]   ;;  %vm511_vm1 = vcmask 261120   ;;  %vm720_vm2 = vcmask 1040384   ;;  %vm722_vm3 = vcmask 1041408  }
  0x5c   : > { %997 = vmatprep.mubr.msk.bf16.mxu0 %vm1210_vm0, %v1209_v0  ;;  %s1483_s13 = smov (!%p450_p2, %s1194_s13), 1  ;;  %1005 = vmatprep.mubr.msk.bf16.mxu1 %vm1210_vm0, %v1209_v0  ;;  %v1086_v7 = vld [vmem:[#allocation6] sm:$0xff]   ;;  %v1087_v8 = vld [vmem:[#allocation6 + $0x8] sm:$0xff]  }
  0x5d   : > { %s1402_s18 = sshll.u32 %s1483_s13, 3  ;;  %994 = vmatpush3.bf16.msra.mxu0 %v1082_v1  ;;  %1002 = vmatpush3.bf16.msra.mxu1 %v1084_v3  ;;  %v970_v9 = vld [vmem:[%s1454_s2] ss:$0 sm:$0xff] }
  0x5e   : > { %s456_s11 = scalar_lea.vmem %s1452_s0, %s1402_s18  ;;  %995 = vmatprep.subr.bf16.mxu0 %v1209_v0  ;;  %1003 = vmatprep.subr.bf16.mxu1 %v1209_v0  ;;  %s463_s28 = scalar_lea.vmem %s1459_s7, %s1402_s18  ;;  %v974_v11 = vld [vmem:[%s1456_s4] ss:$0 sm:$0xff] }
  0x5f   : > { %v486_v4 = vld [vmem:[%s456_s11] sm:$0xff]  ;;  %s470_s19 = scalar_lea.vmem %s1460_s8, %s1402_s18  ;;  %s477_s17 = scalar_lea.vmem %s1461_s9, %s1402_s18 }
  0x60   : > { %v487_v6 = vpack.c.bf16 %v486_v4, %v486_v4  ;;  %v978_v24 = vld [vmem:[%s1458_s6] ss:$0 sm:$0xff]  ;;  %s969_s11 = sshll.u32 %s1483_s13, 2 }
  0x61   : > { %996 = vmatpush3.bf16.msra.mxu0 %v1083_v2  ;;  %1004 = vmatpush3.bf16.msra.mxu1 %v1085_v5  ;;  %s484_s23 = scalar_lea.vmem %s1462_s10, %s969_s11 }
  0x62   : > { %1009 = vmatprep.subr.bf16.mxu0 %v1209_v0 }
  0x64   : > { %998 = vmatmul.mubr.msk.bf16.vlgmr.msra.gmra.mrb[0].mxu0 %vm511_vm1, %v487_v6  ;;  %1006 = vmatmul.mubr.msk.bf16.vlgmr.msra.gmra.mrb[0].mxu1 %vm511_vm1, %v487_v6 }
  0x65   : > { %1010 = vmatpush3.bf16.msra.mxu0 %v1086_v7  ;;  %1013 = vmatprep.mubr.msk.bf16.mxu0 %vm1210_vm0, %v1209_v0 }
  0x66   : > { %1011 = vmatprep.subr.bf16.mxu0 %v1209_v0 }
  0x69   : > { %1012 = vmatpush3.bf16.msra.mxu0 %v1087_v8 }
  0x6c   : > { %1014 = vmatmul.mubr.msk.bf16.vlgmr.msra.gmra.mrb[4].mxu0 %vm511_vm1, %v487_v6 }
 0x137   : > { %v549_v10 = vpop.f32.mrb[0].mxu0  ;;  %v624_v15 = vpop.f32.mrb[0].mxu1 }
 0x138   : > { %v550_v12 = vadd.f32 %v970_v9, %v549_v10  ;;  %v999_v13 = vpop.f32.mrb[1].mxu0  ;;  %v625_v17 = vadd.f32 %v974_v11, %v624_v15  ;;  %v1007_v18 = vpop.f32.mrb[1].mxu1 }
 0x139   : > { %v552_v14 = vpop.f32.mrb[2].mxu0  ;;  %v627_v20 = vpop.f32.mrb[2].mxu1 }
 0x13a   : > { %555 = vst.msk [vmem:[%s463_s28] sm:$0xff] %vm511_vm1, %v550_v12  ;;  %v1000_v16 = vpop.f32.mrb[3].mxu0  ;;  %v556_v19 = vand.u32 2147483647, %v550_v12  ;;  %630 = vst.msk [vmem:[%s470_s19] sm:$0xff] %vm511_vm1, %v625_v17  ;;  %v1008_v22 = vpop.f32.mrb[3].mxu1 }
 0x13b   : > { %v631_v23 = vand.u32 2147483647, %v625_v17 }
 0x13c   : > { %v557_v21 = vsel %vm511_vm1, %v556_v19, -inf }
 0x13d   : > { %558 = vmax.xlane.f32.xlu0 %v557_v21  ;;  %v632_v25 = vsel %vm511_vm1, %v631_v23, -inf }
 0x13f   : > { %v699_v26 = vpop.f32.mrb[4].mxu0 }
 0x140   : > { %v700_v27 = vadd.f32 %v978_v24, %v699_v26  ;;  %v1015_v28 = vpop.f32.mrb[5].mxu0 }
 0x141   : > { %633 = vmax.xlane.f32.xlu0 %v632_v25  ;;  %v702_v29 = vpop.f32.mrb[6].mxu0 }
 0x142   : > { %705 = vst.msk [vmem:[%s477_s17] sm:$0xff] %vm511_vm1, %v700_v27  ;;  %v1016_v30 = vpop.f32.mrb[7].mxu0  ;;  %v706_v31 = vand.u32 2147483647, %v700_v27 }
 0x144   : > { %v707_v32 = vsel %vm511_vm1, %v706_v31, -inf }
 0x145   : > { %708 = vmax.xlane.f32.xlu1 %v707_v32 }
 0x1ca   : > { %v559_v33 = vpop.xlane.xlu0 %558 }
 0x1cb   : > { %v560_v34 = vrot.slane %v559_v33, 4 }
 0x1cd   : > { %v561_v35 = vmax.f32 %v559_v33, %v560_v34 }
 0x1ce   : > { %v634_v36 = vpop.xlane.xlu0 %633 }
 0x1cf   : > { %v562_v37 = vrot.slane %v561_v35, 2  ;;  %v635_v38 = vrot.slane %v634_v36, 4 }
 0x1d1   : > { %v636_v39 = vmax.f32 %v634_v36, %v635_v38  ;;  %v563_v40 = vmax.f32 %v561_v35, %v562_v37 }
 0x1d2   : > { %v709_v41 = vpop.xlane.xlu1 %708 }
 0x1d3   : > { %v637_v42 = vrot.slane %v636_v39, 2  ;;  %v710_v43 = vrot.slane %v709_v41, 4  ;;  %v564_v44 = vrot.slane %v563_v40, 1 }
 0x1d5   : > { %v638_v45 = vmax.f32 %v636_v39, %v637_v42  ;;  %v711_v46 = vmax.f32 %v709_v41, %v710_v43  ;;  %v565_v47 = vmax.f32 %v563_v40, %v564_v44 }
 0x1d7   : > { %v712_v48 = vrot.slane %v711_v46, 2  ;;  %1017 = vpush %v565_v47  ;;  %v639_v49 = vrot.slane %v638_v45, 1 }
 0x1d9   : > { %v713_v50 = vmax.f32 %v711_v46, %v712_v48  ;;  %v640_v51 = vmax.f32 %v638_v45, %v639_v49 }
 0x1db   : > { %1019 = vpush %v640_v51  ;;  %v714_v52 = vrot.slane %v713_v50, 1 }
 0x1dd   : > { %v715_v53 = vmax.f32 %v713_v50, %v714_v52 }
 0x1df   : > { %1021 = vpush %v715_v53 }
 0x208   : > { %s1018_s18 = spop %1017 }
 0x209   : > { %v717_v55 = vstv %s1018_s18 }
 0x20c   : > { %s1020_s21 = spop %1019 }
 0x20d   : > { %v718_v54 = vstv %s1020_s21 }
 0x20e   : > { %v721_v56 = vsel %vm720_vm2, %v717_v55, %v718_v54 }
 0x210   : > { %s1022_s27 = spop %1021 }
 0x211   : > { %v719_v57 = vstv %s1022_s27 }
 0x212   : > { %v723_v58 = vsel %vm722_vm3, %v721_v56, %v719_v57 }
 0x213   : > { %724 = vst [vmem:[%s484_s23] sm:$0x7] %v723_v58 }
 0x214 PF: > { %s1477_s28 = sld [smem:[#allocation10_spill]]  ;;  %s1478_s13 = sld [smem:[#allocation9_spill]] }
 0x215   : > { %s1479_s14 = smov %s1481_s22 }
 0x21a   : > { %s23_s15 = sadd.s32 1, %s1477_s28  }
 0x21b   : > { %p20_p5 = scmp.ge.s32.totalorder %s23_s15, 4  }
 0x21d   :  { %22 = sbr.rel (!%p20_p5) target bundleno = 3 (0x3), region = 127 }
 0x224   :  { %810 = vsyncpa [#allocation3], 1 }
 0x225   :  { %812 = vsyncpa [#allocation3 + $0x1], 1 }
 0x226   :  { %813 = vsyncpa [#allocation5], 1 }

// kernel: bert_attention.6
= control target key start
LH: loop header
LB: loop body
LE: loop exit
PB: predicated region body
PF: predicated region fallthrough
CT: control target
= control target key end

     0   :  { %10 = vsyncpa [#allocation3], 0  ;;  %s1148_s15 = smov 0   ;;  %s1150_s16 = smov 0   ;;  %s1285_s0 = inlined_call_operand.vmem [shape: f32[3], index: 0, kind: input, shape index: {}]   ;;  %s1286_s1 = inlined_call_operand.vmem [shape: f32[2,4,8,8], index: 1, kind: input, shape index: {}]   ;;  %s1287_s2 = inlined_call_operand.vmem [shape: f32[2,8,32], index: 2, kind: input, shape index: {}]   ;;  %s1288_s3 = inlined_call_operand.vmem [shape: f32[2,8,32], index: 3, kind: output, shape index: {0}]   ;;  %s1289_s4 = inlined_call_operand.vmem [shape: f32[2,1,1,128], index: 4, kind: output, shape index: {1}]  }
   0x1   :  { %s1152_s17 = smov 0  }
   0x2 LB: > { %s956_s18 = sadd.s32 4294967295, %s1110_s17   ;;  %s28_s19 = sadd.s32 1, %s1106_s16  ;;  %s1110_s17 = sphi %s1152_s17, %s16_s17   ;;  %s1106_s16 = sphi %s1150_s16, %s1293_s16   ;;  %s1102_s15 = sphi %s1148_s15, %s1292_s15  }
   0x3   : > { %p30_p0 = scmp.ge.s32.totalorder %s28_s19, 2  ;;  %p958_p1 = scmp.ge.s32.totalorder %s1110_s17, 1 }
   0x4   : > { %p164_p2 = scmp.lt.s32.totalorder %s1110_s17, 3  ;;  %p1173_p4 = scmp.eq.s32.totalorder %s956_s18, 0 }
   0x5   : > { %s1295_s19 = smov (%p30_p0, %s28_s19), 0  ;;  %s177_s24 = sshll.u32 %s1285_s0, 4  ;;  %s178_s24 = int_to_ptr.vmem [resolvable:$true] %s177_s24 }
   0x6   : > { %p1169_p3 = pnand %p958_p1, %p164_p2  ;;  %s1069_s25 = scalar_lea.vmem %s178_s24, 16 }
   0x7   : > { %p1070_p7 = scmp.ne.s32.totalorder %s178_s24, %s1069_s25  ;;  %p1077_p11 = scmp.lt.s32.totalorder %s178_s24, %s178_s24 }
   0x8   : > { %p1028_p5 = pneg %p1169_p3  ;;  %p1078_p12 = scmp.lt.s32.totalorder %s1069_s25, %s1069_s25 }
   0xa   : > { %p1029_p6 = pnand %p1173_p4, %p1028_p5  ;;  %p1079_p13 = por %p1078_p12, %p1077_p11 }
   0xc   : > { %p1071_p8 = pneg %p1029_p6 }
   0xe   : > { %p1072_p9 = pnand %p1071_p8, %p1070_p7 }
  0x10   : > { %p1073_p10 = pneg %p1072_p9 }
  0x12   : > { %p1080_p0 = pnand %p1079_p13, %p1073_p10 }
  0x14   : > { %1083 = shalt.err (!%p1080_p0)
}
  0x15   : > { %s1112_s26 = smov [#allocation2]   ;;  %208 = sbr.rel (%p1169_p3) target bundleno = 755 (0x2f3), region = 32 }
  0x16   : > { %1031 = dma.vmem_to_smem (!%p1029_p6), %s178_s24, 16, %s1112_s26, [#allocation3]  }
  0x1c   : > { %1097 = dma.done.wait (%p1173_p4), [#allocation3], 16  }
  0x1d   : > { %1099 = vsyncadd (%p1173_p4), [#allocation3], 4294967280 }
  0x1e   : > { %214 = sfence }
  0x1f   : > { %p250_p1 = scmp.lt.s32.totalorder %s1102_s15, 1  ;;  %s967_s27 = sld [smem:[#allocation2 + $0x1]]  ;;  %v1115_v5 = vmov 0.0   ;;  %vm1117_vm0 = vmmov 0   ;;  %v1118_v6 = vmov 1983009808   ;;  %v325_v8 = vlaneseq }
  0x20   : > { %s1113_s6 = smov 104   ;;  %s1114_s7 = smov 120   ;;  %993 = vmatprep.subr.bf16.mxu0 %v1115_v5  ;;  %999 = vmatprep.subr.bf16.mxu1 %v1115_v5  ;;  %v323_v7 = vunpack.c.l.s4 %v1118_v6  ;;  %v1119_v9 = vmov 1934713408   ;;  %vm464_vm1 = vcmask 1043456   ;;  %vm460_vm2 = vcmask 64512  }
  0x21   : > { %s1297_s15 = smov (!%p250_p1, %s1102_s15), 1  ;;  %s1116_s8 = smov 112   ;;  %995 = vmatprep.mubr.msk.bf16.mxu0 %vm1117_vm0, %v1115_v5  ;;  %1001 = vmatprep.mubr.msk.bf16.mxu1 %vm1117_vm0, %v1115_v5  ;;  %v355_v10 = vunpack.c.l.s4 %v1119_v9  ;;  %v326_v12 = vshrl.u32 %v325_v8, 7  ;;  %vm800_vm3 = vcmask 130048   ;;  %vm802_vm4 = vcmask 195584  }
  0x22   : > { %s965_s28 = sshll.u32 %s1297_s15, 3  ;;  %v324_v11 = vunpack.c.0.s8 %v323_v7  ;;  %s984_s9 = sshll.u32 %s1297_s15, 5  ;;  %vm804_vm5 = vcmask 261120  }
  0x23   : > { %s261_s5 = scalar_lea.vmem %s1287_s2, %s965_s28  ;;  %v356_v15 = vunpack.c.0.s8 %v355_v10  ;;  %s276_s10 = sld [smem:[#allocation2]] }
  0x24   : > { %v304_v0 = vld [vmem:[%s261_s5] sm:$0xff]  ;;  %v1206_v16 = vsub.s32 %v324_v11, %v326_v12  ;;  %s1214_s13 = scalar_lea.vmem %s1286_s1, %s984_s9  ;;  %s968_s14 = sld [smem:[#allocation2 + $0x2]] }
  0x25   : > { %v307_v1 = vstv %s967_s27  ;;  %v973_v2 = vclamps-f32 %v304_v0, 2.5  ;;  %v1209_v22 = vsub.s32 %v356_v15, %v326_v12  ;;  %v279_v31 = vld [vmem:[%s1214_s13] sm:$0xff]  ;;  %v280_v32 = vld [vmem:[%s1214_s13 + $0x8] sm:$0xff]  ;;  %v281_v54 = vld [vmem:[%s1214_s13 + $0x10] sm:$0xff]  ;;  %s1120_s18 = smov 16   ;;  %s1121_s20 = smov 8  }
  0x26   : > { %v969_v37 = vclamps-f32 %v279_v31, 2.5  ;;  %v970_v39 = vclamps-f32 %v280_v32, 2.5  ;;  %v282_v55 = vld [vmem:[%s1214_s13 + $0x18] sm:$0xff]  ;;  %v971_v62 = vclamps-f32 %v281_v54, 2.5  ;;  %s1122_s21 = smov 24   ;;  %s268_s24 = scalar_lea.vmem %s1288_s3, %s965_s28 }
  0x27   : > { %v308_v3 = vmul.f32 %v973_v2, %v307_v1  ;;  %v972_v63 = vclamps-f32 %v282_v55, 2.5  ;;  %s274_s27 = scalar_lea.vmem %s1289_s4, %s1297_s15 }
  0x29   : > { %v1021_v4 = vround.rtne.f32 %v308_v3  ;;  %v291_v38 = vstv %s276_s10 }
  0x2a   : > { %v292_v48 = vmul.f32 %v969_v37, %v291_v38  ;;  %v293_v49 = vmul.f32 %v970_v39, %v291_v38  ;;  %v294_v9 = vmul.f32 %v971_v62, %v291_v38  ;;  %v295_v10 = vmul.f32 %v972_v63, %v291_v38 }
  0x2b   : > { %317 = vrot.lane.b32.xlu1 %v1021_v4, %s1113_s6  ;;  %311 = vrot.lane.b32.xlu0 %v1021_v4, %s1114_s7  ;;  %v646_v31 = vstv %s968_s14 }
  0x2c   : > { %v1017_v60 = vround.rtne.f32 %v292_v48  ;;  %v1018_v61 = vround.rtne.f32 %v293_v49 }
  0x2e   : > { %v300_v7 = vpack.c.bf16 %v1017_v60, %v1017_v60  ;;  %v301_v8 = vpack.c.bf16 %v1018_v61, %v1018_v61 }
  0x2f   : > { %314 = vrot.lane.b32.xlu0 %v1021_v4, %s1116_s8 }
  0x9d   : > { %v318_v13 = vpop.permute.xlu1 %317  ;;  %v312_v14 = vpop.permute.xlu0 %311 }
  0x9e   : > { %v336_v17 = vcombine.low %v312_v14, %v318_v13  ;;  %v337_v18 = vcombine.high %v312_v14, %v318_v13 }
  0xa0   : > { %v344_v23 = vrot.slane %v336_v17, %v1206_v16  ;;  %v351_v24 = vrot.slane %v337_v18, %v1206_v16  ;;  %v1019_v18 = vround.rtne.f32 %v294_v9 }
  0xa1   : > { %v315_v19 = vpop.permute.xlu0 %314 }
  0xa2   : > { %v320_v20 = vcombine.low %v1021_v4, %v315_v19  ;;  %v321_v21 = vcombine.high %v1021_v4, %v315_v19  ;;  %v1020_v19 = vround.rtne.f32 %v295_v10 }
  0xa4   : > { %v328_v25 = vrot.slane %v320_v20, %v1206_v16  ;;  %v335_v26 = vrot.slane %v321_v21, %v1206_v16  ;;  %v302_v20 = vpack.c.bf16 %v1019_v18, %v1019_v18  ;;  %v303_v21 = vpack.c.bf16 %v1020_v19, %v1020_v19 }
  0xa6   : > { %v352_v27 = vcombine.low %v328_v25, %v344_v23  ;;  %v353_v28 = vcombine.high %v328_v25, %v344_v23  ;;  %v368_v29 = vcombine.low %v335_v26, %v351_v24  ;;  %v369_v30 = vcombine.high %v335_v26, %v351_v24 }
  0xa8   : > { %v360_v33 = vrot.slane %v352_v27, %v1209_v22  ;;  %v367_v34 = vrot.slane %v353_v28, %v1209_v22  ;;  %v376_v35 = vrot.slane %v368_v29, %v1209_v22  ;;  %v383_v36 = vrot.slane %v369_v30, %v1209_v22 }
  0xaa   : > { %v388_v40 = vcombine.low %v360_v33, %v367_v34  ;;  %v974_v41 = vcombine.high %v360_v33, %v367_v34  ;;  %v404_v42 = vcombine.low %v376_v35, %v383_v36  ;;  %v975_v43 = vcombine.high %v376_v35, %v383_v36 }
  0xac   : > { %v395_v44 = vrot.slane %v388_v40, %v1206_v16  ;;  %v403_v45 = vrot.slane %v974_v41, %v1206_v16  ;;  %v411_v46 = vrot.slane %v404_v42, %v1206_v16  ;;  %v419_v47 = vrot.slane %v975_v43, %v1206_v16 }
  0xae   : > { %v420_v50 = vcombine.low %v395_v44, %v403_v45  ;;  %v436_v51 = vcombine.low %v411_v46, %v419_v47  ;;  %v421_v52 = vcombine.high %v395_v44, %v403_v45  ;;  %v437_v53 = vcombine.high %v411_v46, %v419_v47 }
  0xb0   : > { %v428_v56 = vrot.slane %v420_v50, %v1209_v22  ;;  %v444_v57 = vrot.slane %v436_v51, %v1209_v22  ;;  %v435_v58 = vrot.slane %v421_v52, %v1209_v22  ;;  %v451_v59 = vrot.slane %v437_v53, %v1209_v22 }
  0xb2   : > { %v452_v0 = vcombine.low %v428_v56, %v444_v57  ;;  %v453_v1 = vcombine.high %v428_v56, %v444_v57  ;;  %v454_v2 = vcombine.low %v435_v58, %v451_v59  ;;  %v455_v3 = vcombine.high %v435_v58, %v451_v59 }
  0xb4   : > { %v456_v4 = vpack.c.bf16 %v452_v0, %v452_v0  ;;  %v457_v6 = vpack.c.bf16 %v453_v1, %v453_v1  ;;  %v458_v13 = vpack.c.bf16 %v454_v2, %v454_v2  ;;  %v459_v14 = vpack.c.bf16 %v455_v3, %v455_v3 }
  0xb6   : > { %v466_v11 = vsel %vm464_vm1, %v456_v4, 0  ;;  %v512_v12 = vsel %vm464_vm1, %v457_v6, 0  ;;  %v558_v15 = vsel %vm464_vm1, %v458_v13, 0  ;;  %v604_v17 = vsel %vm464_vm1, %v459_v14, 0 }
  0xb7   : > { %994 = vmatpush3.bf16.msra.mxu0 %v466_v11  ;;  %1000 = vmatpush3.bf16.msra.mxu1 %v512_v12 }
  0xb8   : > { %1005 = vmatprep.subr.bf16.mxu0 %v1115_v5  ;;  %1011 = vmatprep.subr.bf16.mxu1 %v1115_v5 }
  0xba   : > { %996 = vmatmul.mubr.msk.bf16.vlgmr.msra.gmra.mrb[0].mxu0 %vm460_vm2, %v300_v7  ;;  %1002 = vmatmul.mubr.msk.bf16.vlgmr.msra.gmra.mrb[0].mxu1 %vm460_vm2, %v301_v8 }
  0xbb   : > { %1006 = vmatpush3.bf16.msra.mxu0 %v558_v15  ;;  %1012 = vmatpush3.bf16.msra.mxu1 %v604_v17 }
  0xbc   : > { %1007 = vmatprep.mubr.msk.bf16.mxu0 %vm1117_vm0, %v1115_v5  ;;  %1013 = vmatprep.mubr.msk.bf16.mxu1 %vm1117_vm0, %v1115_v5 }
  0xc2   : > { %1008 = vmatmul.mubr.msk.bf16.vlgmr.msra.gmra.mrb[4].mxu0 %vm460_vm2, %v302_v20  ;;  %1014 = vmatmul.mubr.msk.bf16.vlgmr.msra.gmra.mrb[4].mxu1 %vm460_vm2, %v303_v21 }
 0x18d   : > { %v502_v23 = vpop.f32.mrb[0].mxu0  ;;  %v548_v24 = vpop.f32.mrb[0].mxu1 }
 0x18e   : > { %v997_v25 = vpop.f32.mrb[1].mxu0  ;;  %v1003_v26 = vpop.f32.mrb[1].mxu1  ;;  %v647_v34 = vmul.f32 %v646_v31, %v502_v23  ;;  %v648_v5 = vmul.f32 %v646_v31, %v548_v24 }
 0x18f   : > { %v505_v27 = vpop.f32.mrb[2].mxu0  ;;  %v551_v28 = vpop.f32.mrb[2].mxu1 }
 0x190   : > { %v998_v29 = vpop.f32.mrb[3].mxu0  ;;  %v1004_v30 = vpop.f32.mrb[3].mxu1 }
 0x195   : > { %v594_v32 = vpop.f32.mrb[4].mxu0  ;;  %v640_v33 = vpop.f32.mrb[4].mxu1 }
 0x196   : > { %v649_v35 = vmul.f32 %v646_v31, %v594_v32  ;;  %v650_v36 = vmul.f32 %v646_v31, %v640_v33  ;;  %v1009_v37 = vpop.f32.mrb[5].mxu0  ;;  %v1015_v38 = vpop.f32.mrb[5].mxu1 }
 0x197   : > { %v597_v39 = vpop.f32.mrb[6].mxu0  ;;  %v643_v40 = vpop.f32.mrb[6].mxu1 }
 0x198   : > { %v651_v41 = vcombine.low %v647_v34, %v649_v35  ;;  %v652_v42 = vcombine.high %v647_v34, %v649_v35  ;;  %v667_v43 = vcombine.low %v648_v5, %v650_v36  ;;  %v668_v44 = vcombine.high %v648_v5, %v650_v36  ;;  %v1010_v45 = vpop.f32.mrb[7].mxu0  ;;  %v1016_v46 = vpop.f32.mrb[7].mxu1 }
 0x19a   : > { %v659_v47 = vrot.slane %v651_v41, %v1206_v16  ;;  %v666_v48 = vrot.slane %v652_v42, %v1206_v16  ;;  %v675_v49 = vrot.slane %v667_v43, %v1206_v16  ;;  %v682_v50 = vrot.slane %v668_v44, %v1206_v16 }
 0x19c   : > { %v683_v51 = vcombine.low %v659_v47, %v675_v49  ;;  %v684_v52 = vcombine.high %v659_v47, %v675_v49  ;;  %v699_v53 = vcombine.low %v666_v48, %v682_v50  ;;  %v700_v54 = vcombine.high %v666_v48, %v682_v50 }
 0x19e   : > { %v691_v55 = vrot.slane %v683_v51, %v1209_v22  ;;  %v698_v56 = vrot.slane %v684_v52, %v1209_v22  ;;  %v707_v57 = vrot.slane %v699_v53, %v1209_v22  ;;  %v714_v58 = vrot.slane %v700_v54, %v1209_v22 }
 0x1a0   : > { %v719_v59 = vcombine.low %v691_v55, %v698_v56  ;;  %v980_v60 = vcombine.high %v691_v55, %v698_v56  ;;  %v735_v61 = vcombine.low %v707_v57, %v714_v58  ;;  %v981_v62 = vcombine.high %v707_v57, %v714_v58 }
 0x1a2   : > { %v726_v63 = vrot.slane %v719_v59, %v1206_v16  ;;  %v734_v0 = vrot.slane %v980_v60, %v1206_v16  ;;  %v742_v1 = vrot.slane %v735_v61, %v1206_v16  ;;  %v750_v2 = vrot.slane %v981_v62, %v1206_v16 }
 0x1a4   : > { %v752_v3 = vcombine.high %v726_v63, %v734_v0  ;;  %v768_v4 = vcombine.high %v742_v1, %v750_v2  ;;  %v751_v6 = vcombine.low %v726_v63, %v734_v0  ;;  %v767_v7 = vcombine.low %v742_v1, %v750_v2 }
 0x1a6   : > { %v766_v8 = vrot.slane %v752_v3, %v1209_v22  ;;  %v782_v9 = vrot.slane %v768_v4, %v1209_v22  ;;  %v759_v10 = vrot.slane %v751_v6, %v1209_v22  ;;  %v775_v11 = vrot.slane %v767_v7, %v1209_v22 }
 0x1a8   : > { %v785_v12 = vcombine.low %v766_v8, %v782_v9  ;;  %v784_v13 = vcombine.high %v759_v10, %v775_v11  ;;  %v786_v14 = vcombine.high %v766_v8, %v782_v9  ;;  %v783_v15 = vcombine.low %v759_v10, %v775_v11 }
 0x1aa   : > { %792 = vrot.lane.b32.xlu0 %v785_v12, %s1120_s18  ;;  %788 = vrot.lane.b32.xlu1 %v784_v13, %s1121_s20 }
 0x1ae   : > { %796 = vrot.lane.b32.xlu1 %v786_v14, %s1122_s21 }
 0x21c   : > { %v789_v16 = vpop.permute.xlu1 %788  ;;  %v793_v17 = vpop.permute.xlu0 %792 }
 0x21d   : > { %v799_v18 = vsel %vm460_vm2, %v783_v15, %v789_v16 }
 0x21e   : > { %v801_v19 = vsel %vm800_vm3, %v799_v18, %v793_v17 }
 0x220   : > { %v797_v22 = vpop.permute.xlu1 %796 }
 0x221   : > { %v803_v20 = vsel %vm802_vm4, %v801_v19, %v797_v22 }
 0x222   : > { %v806_v21 = vand.u32 2147483647, %v803_v20  ;;  %805 = vst.msk [vmem:[%s268_s24] sm:$0xff] %vm804_vm5, %v803_v20 }
 0x224   : > { %v807_v23 = vsel %vm804_vm5, %v806_v21, -inf }
 0x225   : > { %808 = vmax.xlane.f32.xlu0 %v807_v23 }
 0x2b2   : > { %v809_v24 = vpop.xlane.xlu0 %808 }
 0x2b3   : > { %v810_v25 = vrot.slane %v809_v24, 4 }
 0x2b5   : > { %v811_v26 = vmax.f32 %v809_v24, %v810_v25 }
 0x2b7   : > { %v812_v27 = vrot.slane %v811_v26, 2 }
 0x2b9   : > { %v813_v28 = vmax.f32 %v811_v26, %v812_v27 }
 0x2bb   : > { %v814_v29 = vrot.slane %v813_v28, 1 }
 0x2bd   : > { %v815_v30 = vmax.f32 %v813_v28, %v814_v29 }
 0x2bf   : > { %1022 = vpush %v815_v30 }
 0x2f0   : > { %s1023_s28 = spop %1022 }
 0x2f1   : > { %v817_v31 = vstv %s1023_s28 }
 0x2f2   : > { %818 = vst [vmem:[%s274_s27] sm:$0x1] %v817_v31 }
 0x2f3 PF: > { %s16_s17 = sadd.s32 1, %s1110_s17   ;;  %s1292_s15 = smov %s1106_s16 }
 0x2f4   : > { %p13_p2 = scmp.ge.s32.totalorder %s16_s17, 4   ;;  %s1293_s16 = smov %s1295_s19 }
 0x2f6   :  { %15 = sbr.rel (!%p13_p2) target bundleno = 2 (0x2), region = 82 }
 0x2fd   :  { %862 = vsyncpa [#allocation3], 1 }
 0x2fe   :  { %864 = vsyncpa [#allocation3 + $0x1], 1 }

// kernel: bert_attention.7
= control target key start
LH: loop header
LB: loop body
LE: loop exit
PB: predicated region body
PF: predicated region fallthrough
CT: control target
= control target key end

     0   :  { %14 = vsyncpa [#allocation4], 0  ;;  %s1146_s0 = inlined_call_operand.vmem [shape: f32[2], index: 0, kind: input, shape index: {}]   ;;  %s1147_s1 = inlined_call_operand.vmem [shape: f32[2,8,32], index: 1, kind: input, shape index: {}]   ;;  %s1148_s2 = inlined_call_operand.vmem [shape: f32[2,8,32], index: 2, kind: input, shape index: {}]   ;;  %s1149_s3 = inlined_call_operand.vmem [shape: bf16[32,32], index: 3, kind: input, shape index: {}]   ;;  %s1150_s4 = inlined_call_operand.vmem [shape: f32[1,32], index: 4, kind: input, shape index: {}]   ;;  %s1151_s5 = inlined_call_operand.vmem [shape: f32[1,32], index: 5, kind: input, shape index: {}]   ;;  %s1152_s6 = inlined_call_operand.vmem [shape: f32[1,32], index: 6, kind: input, shape index: {}]   ;;  %s1153_s7 = inlined_call_operand.hbm [shape: f32[2,8,32], index: 7, kind: output, shape index: {0}]   ;;  %s1154_s8 = inlined_call_operand.hbm [shape: f32[2,8,32], index: 8, kind: output, shape index: {1}]  }
   0x1   :  { %15 = vsyncpa [#allocation3], 0 }
   0x2   :  { %17 = vsyncpa [#allocation3 + $0x1], 0 }
   0x3   :  { %18 = vsyncpa [#allocation7], 0 }
   0x4   :  { %20 = vsyncpa [#allocation7 + $0x1], 0  ;;  %s955_s27 = smov 0   ;;  %s957_s28 = smov 0  }
   0x5   :  { %s959_s29 = smov 0   ;;  %s961_s30 = smov 0  }
   0x6   :  { %s963_s9 = smov 0   ;;  %s965_s10 = smov 0  }
   0x7 LB: > { %s660_s11 = sadd.s32 4294967295, %s903_s10   ;;  %s661_s12 = sadd.s32 4294967294, %s903_s10   ;;  %s903_s10 = sphi %s965_s10, %s26_s10   ;;  %s899_s9 = sphi %s963_s9, %s1167_s9   ;;  %s895_s30 = sphi %s961_s30, %s1166_s30   ;;  %s891_s29 = sphi %s959_s29, %s1165_s29   ;;  %s887_s28 = sphi %s957_s28, %s1164_s28   ;;  %s883_s27 = sphi %s955_s27, %s1163_s27  }
   0x8   : > { %s38_s13 = sadd.s32 1, %s899_s9  ;;  %s208_s14 = sadd.s32 1, %s891_s29 }
   0x9   : > { %p40_p0 = scmp.ge.s32.totalorder %s38_s13, 2  ;;  %p218_p1 = scmp.ne.s32.totalorder %s891_s29, %s887_s28 }
   0xa   : > { %p219_p2 = scmp.eq.s32.totalorder %s660_s11, 1  ;;  %p224_p3 = scmp.ne.s32.totalorder %s887_s28, %s883_s27 }
   0xb   : > { %s1169_s13 = smov (%p40_p0, %s38_s13), 0  ;;  %p225_p5 = scmp.eq.s32.totalorder %s661_s12, 1 }
   0xc   : > { %p995_p4 = por %p219_p2, %p218_p1  ;;  %s203_s16 = ssub.s32 %s899_s9, %s1169_s13 }
   0xd   : > { %p662_p6 = scmp.ge.s32.totalorder %s903_s10, 1  ;;  %p206_p7 = scmp.eq.s32.totalorder %s203_s16, 0 }
   0xe   : > { %p1002_p8 = por %p225_p5, %p224_p3  ;;  %p260_p9 = scmp.lt.s32.totalorder %s903_s10, 3 }
   0xf   : > { %s1008_s18 = scalar_select %p206_p7, %s891_s29, %s208_s14  }
  0x10   : > { %p1010_p10 = pnand %p662_p6, %p260_p9  ;;  %p1014_p11 = scmp.eq.s32.totalorder %s660_s11, 0 }
  0x11   : > { %s273_s23 = sshll.u32 %s1146_s0, 4  ;;  %s274_s23 = int_to_ptr.vmem [resolvable:$true] %s273_s23 }
  0x12   : > { %p705_p12 = pneg %p1010_p10  ;;  %s774_s24 = scalar_lea.vmem %s274_s23, 16 }
  0x13   : > { %p775_p0 = scmp.ne.s32.totalorder %s274_s23, %s774_s24  ;;  %p782_p5 = scmp.lt.s32.totalorder %s274_s23, %s274_s23 }
  0x14   : > { %p706_p13 = pnand %p1014_p11, %p705_p12  ;;  %p783_p6 = scmp.lt.s32.totalorder %s774_s24, %s774_s24 }
  0x16   : > { %p776_p1 = pneg %p706_p13  ;;  %p784_p7 = por %p783_p6, %p782_p5 }
  0x18   : > { %p777_p2 = pnand %p776_p1, %p775_p0 }
  0x1a   : > { %p778_p3 = pneg %p777_p2 }
  0x1c   : > { %p785_p9 = pnand %p784_p7, %p778_p3 }
  0x1e   : > { %788 = shalt.err (!%p785_p9)
}
  0x1f   : > { %s905_s25 = smov [#allocation2]   ;;  %318 = sbr.rel (%p1010_p10) target bundleno = 601 (0x259), region = 48 }
  0x20   : > { %708 = dma.vmem_to_smem (!%p706_p13), %s274_s23, 16, %s905_s25, [#allocation4]  }
  0x26   : > { %870 = dma.done.wait (%p1014_p11), [#allocation4], 16  }
  0x27   : > { %872 = vsyncadd (%p1014_p11), [#allocation4], 4294967280 }
  0x28   : > { %324 = sfence }
  0x29   : > { %v770_v0 = vld [vmem:[%s1149_s3] sm:$0xff]   ;;  %v906_v1 = vmov 0.0   ;;  %v771_v2 = vld [vmem:[%s1149_s3 + $0x8] sm:$0xff]   ;;  %vm907_vm0 = vmmov 0   ;;  %p367_p10 = scmp.lt.s32.totalorder %s895_s30, 1  ;;  %s382_s16 = sld [smem:[#allocation2]] }
  0x2a   : > { %688 = vmatprep.subr.bf16.mxu0 %v906_v1  ;;  %692 = vmatprep.mubr.msk.bf16.mxu0 %vm907_vm0, %v906_v1  ;;  %vm407_vm1 = vcmask 261120   ;;  %s671_s24 = sld [smem:[#allocation2 + $0x1]]  ;;  %s1044_s25 = sand.u32 1, %s887_s28   ;;  %v676_v11 = vld [vmem:[%s1150_s4] ss:$0 sm:$0xff] }
  0x2b   : > { %689 = vmatpush3.bf16.msra.mxu0 %v770_v0  ;;  %s368_s19 = scalar_select %p367_p10, %s895_s30, 1 }
  0x2c   : > { %690 = vmatprep.subr.bf16.mxu0 %v906_v1  ;;  %s1155_s14 = sshll.u32 %s1044_s25, 3  ;;  %s501_s11 = scalar_lea.sflag [#allocation7], %s1044_s25 }
  0x2d   : > { %s669_s20 = sshll.u32 %s368_s19, 3  ;;  %s366_s21 = scalar_lea.vmem [#allocation6], %s1155_s14 }
  0x2e   : > { %s373_s23 = scalar_lea.vmem %s1147_s1, %s669_s20  ;;  %s380_s12 = scalar_lea.vmem %s1148_s2, %s669_s20 }
  0x2f   : > { %691 = vmatpush3.bf16.msra.mxu0 %v771_v2  ;;  %v384_v3 = vld [vmem:[%s373_s23] sm:$0xff]  ;;  %v387_v4 = vstv %s382_s16  ;;  %s1156_s20 = sshll.u32 %s895_s30, 7  ;;  %s529_s26 = sshll.u32 %s366_s21, 4  ;;  %s530_s26 = int_to_ptr.vmem [resolvable:$true] %s529_s26 }
  0x30   : > { %v672_v5 = vclamps-f32 %v384_v3, 2.5  ;;  %v451_v9 = vstv %s671_s24  ;;  %v462_v15 = vld [vmem:[%s380_s12] sm:$0xff]  ;;  %s1064_s24 = scalar_lea.hbm %s1154_s8, %s1156_s20  ;;  %s789_s12 = scalar_lea.vmem %s530_s26, 128 }
  0x31   : > { %p790_p11 = scmp.ne.s32.totalorder %s530_s26, %s789_s12  ;;  %s908_s16 = smov [#allocation6]  }
  0x32   : > { %v388_v6 = vmul.f32 %v672_v5, %v387_v4  ;;  %s793_s19 = sshll.u32 %s908_s16, 4  ;;  %s794_s19 = int_to_ptr.vmem [resolvable:$false] %s793_s19 }
  0x33   : > { %p791_p12 = pnand %p790_p11, %p995_p4  ;;  %s795_s14 = scalar_lea.vmem %s794_s19, 256 }
  0x34   : > { %v696_v7 = vround.rtne.f32 %v388_v6  ;;  %p796_p0 = scmp.lt.s32.totalorder %s530_s26, %s794_s19  ;;  %p797_p1 = scmp.lt.s32.totalorder %s795_s14, %s789_s12 }
  0x35   : > { %p792_p13 = pneg %p791_p12 }
  0x36   : > { %v390_v8 = vpack.c.bf16 %v696_v7, %v696_v7  ;;  %p798_p2 = por %p797_p1, %p796_p0 }
  0x38   : > { %693 = vmatmul.mubr.msk.bf16.vlgmr.msra.gmra.mrb[0].mxu0 %vm407_vm1, %v390_v8  ;;  %p799_p3 = pnand %p798_p2, %p792_p13 }
 0x10b   : > { %v445_v10 = vpop.f32.mrb[0].mxu0 }
 0x10c   : > { %v452_v12 = vmul.f32 %v451_v9, %v445_v10  ;;  %v694_v13 = vpop.f32.mrb[1].mxu0 }
 0x10d   : > { %v448_v14 = vpop.f32.mrb[2].mxu0 }
 0x10e   : > { %v460_v16 = vadd.f32 %v676_v11, %v452_v12  ;;  %v695_v17 = vpop.f32.mrb[3].mxu0 }
 0x110   : > { %v463_v18 = vadd.f32 %v462_v15, %v460_v16  ;;  %461 = vst.msk [vmem:[%s366_s21] sm:$0xff] %vm407_vm1, %v460_v16 }
 0x112   : > { %v464_v19 = vsel %vm407_vm1, %v463_v18, 0.0 }
 0x113   : > { %465 = vadd.xlane.f32.xlu0 %v464_v19 }
 0x1a0   : > { %v466_v20 = vpop.xlane.xlu0 %465 }
 0x1a1   : > { %v468_v21 = vmul.f32 0.03125, %v466_v20 }
 0x1a3   : > { %v469_v22 = vsub.f32 %v463_v18, %v468_v21 }
 0x1a5   : > { %v470_v23 = vmul.f32 %v469_v22, %v469_v22 }
 0x1a7   : > { %v471_v24 = vsel %vm407_vm1, %v470_v23, 0.0 }
 0x1a8   : > { %472 = vadd.xlane.f32.xlu0 %v471_v24 }
 0x1a9   : > { %802 = shalt.err (!%p799_p3)
}
 0x1aa   : > { %s803_s21 = scalar_lea.hbm %s1064_s24, 128  ;;  %s807_s16 = scalar_lea.hbm %s1154_s8, 256 }
 0x1ab   : > { %p804_p5 = scmp.ne.s32.totalorder %s1064_s24, %s803_s21  ;;  %p808_p9 = scmp.lt.u32.totalorder %s1064_s24, %s1154_s8 }
 0x1ac   : > { %p809_p10 = scmp.lt.u32.totalorder %s807_s16, %s803_s21  ;;  %p811_p12 = scmp.lt.u32.totalorder %s803_s21, %s1064_s24 }
 0x1ad   : > { %p805_p6 = pnand %p804_p5, %p995_p4 }
 0x1ae   : > { %p810_p11 = por %p809_p10, %p808_p9 }
 0x1af   : > { %p806_p7 = pneg %p805_p6 }
 0x1b0   : > { %p812_p13 = por %p811_p12, %p810_p11 }
 0x1b2   : > { %p813_p0 = pnand %p812_p13, %p806_p7 }
 0x1b4   : > { %816 = shalt.err (!%p813_p0)
}
 0x1b5   : > { %702 = dma.vmem_to_hbm [thread:$0]  (%p995_p4), %s530_s26, 128, %s1064_s24, %s501_s11   ;;  %v677_v29 = vld [vmem:[%s1151_s5] ss:$0 sm:$0xff] }
 0x1b6   : > { %v678_v31 = vld [vmem:[%s1152_s6] ss:$0 sm:$0xff]  ;;  %s1161_s22 = sshll.u32 %s1044_s25, 3  ;;  %s1162_s24 = sshll.u32 %s895_s30, 7 }
 0x1b7   : > { %s359_s23 = scalar_lea.vmem [#allocation5], %s1161_s22  ;;  %s1097_s19 = scalar_lea.hbm %s1153_s7, %s1162_s24 }
 0x1b8   : > { %s515_s16 = sshll.u32 %s359_s23, 4  ;;  %s496_s14 = scalar_lea.sflag [#allocation3], %s1044_s25  ;;  %s1099_s16 = int_to_ptr.vmem [resolvable:$true] %s515_s16 }
 0x1b9   : > { %s817_s20 = scalar_lea.vmem %s1099_s16, 128  ;;  %s909_s12 = smov [#allocation5]  }
 0x1ba   : > { %p818_p1 = scmp.ne.s32.totalorder %s1099_s16, %s817_s20  ;;  %s821_s30 = sshll.u32 %s909_s12, 4  ;;  %s822_s30 = int_to_ptr.vmem [resolvable:$false] %s821_s30 }
 0x1bb   : > { %s823_s21 = scalar_lea.vmem %s822_s30, 256  ;;  %p824_p5 = scmp.lt.s32.totalorder %s1099_s16, %s822_s30 }
 0x1bc   : > { %p819_p2 = pnand %p818_p1, %p995_p4  ;;  %p825_p6 = scmp.lt.s32.totalorder %s823_s21, %s817_s20 }
 0x1be   : > { %p820_p3 = pneg %p819_p2  ;;  %p826_p7 = por %p825_p6, %p824_p5 }
 0x1c0   : > { %p827_p9 = pnand %p826_p7, %p820_p3 }
 0x235   : > { %v473_v25 = vpop.xlane.xlu0 %472 }
 0x236   : > { %v474_v26 = vmul.f32 0.03125, %v473_v25 }
 0x238   : > { %v475_v27 = vadd.f32 1e-12, %v474_v26 }
 0x23a   : > { %772 = vrsqrt.f32 %v475_v27 }
 0x244   : > { %v773_v28 = vpop.eup %772 }
 0x245   : > { %v477_v30 = vmul.f32 %v773_v28, %v469_v22 }
 0x247   : > { %v485_v32 = vmul.f32 %v677_v29, %v477_v30 }
 0x249   : > { %v493_v33 = vadd.f32 %v678_v31, %v485_v32 }
 0x24b   : > { %494 = vst.msk [vmem:[%s359_s23] sm:$0xff] %vm407_vm1, %v493_v33 }
 0x24c   : > { %830 = shalt.err (!%p827_p9)
}
 0x24d   : > { %s831_s25 = scalar_lea.hbm %s1097_s19, 128  ;;  %s835_s24 = scalar_lea.hbm %s1153_s7, 256 }
 0x24e   : > { %p832_p10 = scmp.ne.s32.totalorder %s1097_s19, %s831_s25  ;;  %p836_p13 = scmp.lt.u32.totalorder %s1097_s19, %s1153_s7 }
 0x24f   : > { %p837_p0 = scmp.lt.u32.totalorder %s835_s24, %s831_s25  ;;  %p839_p2 = scmp.lt.u32.totalorder %s831_s25, %s1097_s19 }
 0x250   : > { %p833_p11 = pnand %p832_p10, %p995_p4 }
 0x251   : > { %p838_p1 = por %p837_p0, %p836_p13 }
 0x252   : > { %p834_p12 = pneg %p833_p11 }
 0x253   : > { %p840_p3 = por %p839_p2, %p838_p1 }
 0x255   : > { %p841_p5 = pnand %p840_p3, %p834_p12 }
 0x257   : > { %844 = shalt.err (!%p841_p5)
}
 0x258   : > { %701 = dma.vmem_to_hbm [thread:$0]  (%p995_p4), %s1099_s16, 128, %s1097_s19, %s496_s14  }
 0x259 PF: > { %p718_p6 = scmp.ge.s32.totalorder %s903_s10, 2  ;;  %s541_s20 = sand.u32 1, %s883_s27  }
 0x25a   : > { %s542_s12 = scalar_lea.sflag [#allocation3], %s541_s20 }
 0x25b   : > { %p710_p7 = pnand %p718_p6, %p1002_p8 }
 0x25d   : > { %874 = dma.done.wait (!%p710_p7), %s542_s12, 128  }
 0x25e   : > { %876 = vsyncadd (!%p710_p7), %s542_s12, 4294967168  ;;  %s551_s30 = scalar_lea.sflag [#allocation7], %s541_s20 }
 0x25f   : > { %878 = dma.done.wait (!%p710_p7), %s551_s30, 128  }
 0x260   : > { %880 = vsyncadd (!%p710_p7), %s551_s30, 4294967168  ;;  %s26_s10 = sadd.s32 1, %s903_s10   ;;  %s1163_s27 = smov %s887_s28 }
 0x261   : > { %p23_p9 = scmp.ge.s32.totalorder %s26_s10, 4   ;;  %s1164_s28 = smov %s891_s29 }
 0x262   : > { %s1165_s29 = smov %s1008_s18  ;;  %s1166_s30 = smov %s899_s9 }
 0x263   : > { %s1167_s9 = smov %s1169_s13  ;;  %25 = sbr.rel (!%p23_p9) target bundleno = 7 (0x7), region = 108 }
 0x26a   :  { %556 = vsyncpa [#allocation3], 1 }
 0x26b   :  { %558 = vsyncpa [#allocation3 + $0x1], 1 }
 0x26c   :  { %559 = vsyncpa [#allocation7], 1 }
 0x26d   :  { %561 = vsyncpa [#allocation7 + $0x1], 1 }
 0x26e   :  { %562 = vsyncpa [#allocation4], 1 }
 0x26f   :  { %564 = vsyncpa [#allocation4 + $0x1], 1 }

</bundles_post_ra>
